<compile_context>
chip_gen: v7x
topology: tpu7x:2x2x1
jax: 0.10.0
libtpu: 0.0.40
codegen_flags: <defaults>
</compile_context>

<pallas_src>
import functools

import jax
import jax.numpy as jnp
from jax import lax
from jax.experimental import pallas as pl
from jax.experimental.pallas import tpu as pltpu


_VMEM_BUDGET = 16 * 1024 * 1024          # conservative working-set budget (v7x: 64 MiB VMEM)
_VMEM_LIMIT = 32 * 1024 * 1024           # scoped VMEM limit handed to Mosaic


# ----------------------------------------------------------------------------------------
# Kernels
# ----------------------------------------------------------------------------------------
def _im2col_matmul(xp, w_ref, b_ref, o_ref, mxu_dtype):
    """Shared body: padded tile (th+2, W+2, Cin) -> one MXU matmul with K = 9*Cin."""
    thp, wp, cin = xp.shape
    th, w = thp - 2, wp - 2
    cout = w_ref.shape[-1]

    if mxu_dtype is not None:            # bf16 MXU operands (v6e/v7x fast path); f32 accum below
        xp = xp.astype(mxu_dtype)

    # Three W-shifted views (sublane shifts done once), then cheap leading-dim shifts for dy.
    xs = [xp[:, dx:dx + w, :] for dx in range(3)]              # each (th+2, W, Cin)
    cols = [xs[dx][dy:dy + th] for dy in range(3) for dx in range(3)]   # 9 x (th, W, Cin)

    # im2col: one MXU matmul with K = 9*Cin instead of 9 tiny-K matmuls + 8 VPU adds.
    patches = jnp.concatenate(cols, axis=-1).reshape(th * w, 9 * cin)
    acc = jnp.dot(patches, w_ref[...], preferred_element_type=jnp.float32)
    acc = acc + b_ref[...]                                     # f32 elementwise tail (v5e-safe)
    # TODO(synk): lane-dense (W*Cout) output packing needs an in-kernel minor-dim reshape;
    # kept as the natural (th, W, Cout) store to stay on the proven lowering path.
    o_ref[0] = acc.reshape(th, w, cout).astype(o_ref.dtype)


def _conv3x3_halo_kernel(xp_ref, w_ref, b_ref, o_ref, *, mxu_dtype):
    # xp_ref: (1, tile_h+2, W+2, Cin)  halo'd padded-input block (VMEM)
    # w_ref : (9*Cin, Cout)            per-tap channel-mixing matrix, K ordered (dy, dx, c)
    # b_ref : (1, Cout)                f32 bias
    # o_ref : (1, tile_h, W, Cout)     output block
    _im2col_matmul(xp_ref[0], w_ref, b_ref, o_ref, mxu_dtype)


def _conv3x3_fused_pad_kernel(x_ref, w_ref, b_ref, o_ref, *, use_refl, mxu_dtype):
    # x_ref: (1, H, W, Cin) unpadded NHWC image; the 1-pixel halo is built here in VMEM,
    # avoiding the HBM round trip of a padded activation copy.
    _, h, w, cin = x_ref.shape
    x = x_ref[0]
    if mxu_dtype is not None:
        x = x.astype(mxu_dtype)          # cast once, before building the halo

    if use_refl:                         # ReflectionPad2d(1)
        left, right = x[:, 1:2, :], x[:, w - 2:w - 1, :]
    else:                                # ZeroPad2d(1)
        left = jnp.zeros((h, 1, cin), x.dtype)
        right = left
    xw = jnp.concatenate([left, x, right], axis=1)             # (H, W+2, Cin)

    if use_refl:
        top, bot = xw[1:2], xw[h - 2:h - 1]
    else:
        top = jnp.zeros((1, w + 2, cin), x.dtype)
        bot = top
    xp = jnp.concatenate([top, xw, bot], axis=0)               # (H+2, W+2, Cin)

    _im2col_matmul(xp, w_ref, b_ref, o_ref, None)              # already cast above


# ----------------------------------------------------------------------------------------
# VMEM sizing (models the (8,128) lane/sublane tile padding of the minor dims)
# ----------------------------------------------------------------------------------------
def _rup(v, m):
    return -(-v // m) * m


def _vmem_array_bytes(lead, sub, lane, itemsize):
    """VMEM footprint of an array whose two minor dims map to (sublane, lane)."""
    return lead * _rup(max(sub, 1), 8) * _rup(max(lane, 1), 128) * itemsize


def _working_set_bytes(th, W, Cin, Cout, in_isz, *, fused_pad):
    """Conservative per-grid-step VMEM working set for a tile of `th` output rows."""
    thp, wp = th + 2, W + 2
    if fused_pad:
        in_blk = _vmem_array_bytes(th, W, Cin, in_isz)          # unpadded image block
        pad_tmp = _vmem_array_bytes(thp, wp, Cin, in_isz)       # in-kernel padded copy
    else:
        in_blk = _vmem_array_bytes(thp, wp, Cin, in_isz)        # halo'd padded block
        pad_tmp = 0
    patches = _vmem_array_bytes(1, th * W, 9 * Cin, in_isz)     # im2col matrix
    shifted = patches                                           # transient shifted views
    acc = _vmem_array_bytes(1, th * W, Cout, 4)                 # f32 accumulator
    out_blk = _vmem_array_bytes(th, W, Cout, 4)                 # output block
    w_blk = _vmem_array_bytes(1, 9 * Cin, Cout, in_isz)         # resident weights
    # 2x on pipelined blocks: BlockSpec double-buffers the HBM<->VMEM DMAs.
    return 2 * in_blk + 2 * out_blk + pad_tmp + patches + shifted + acc + w_blk


def _pick_tile_h(H, W, Cin, Cout, in_isz, budget=_VMEM_BUDGET):
    """Largest H-tile (divisor of H) whose working set fits the budget (halo'd path)."""
    cands = [th for th in range(1, H + 1)
             if H % th == 0
             and _working_set_bytes(th, W, Cin, Cout, in_isz, fused_pad=False) <= budget]
    if not cands:
        return 1  # TODO(synk): add W tiling for feature maps too wide for a single-row block.
    aligned = [th for th in cands if (th * W) % 8 == 0]         # keep MXU M a multiple of 8
    return max(aligned) if aligned else max(cands)


# ----------------------------------------------------------------------------------------
# Wrapper
# ----------------------------------------------------------------------------------------
def conv3x3_pallas(x_nchw, weight_oihw, bias, *, use_refl=True, tile_h=None, mxu_dtype=None):
    """Forward pass of Conv3x3 (pad-by-1 then 3x3 conv with bias). x_nchw: (N, Cin, H, W)."""
    N, Cin, H, W = x_nchw.shape
    Cout = weight_oihw.shape[0]
    out_dtype = x_nchw.dtype
    in_isz = jnp.dtype(x_nchw.dtype).itemsize

    # NCHW -> NHWC so channels sit on the MXU lane axis.
    x_nhwc = jnp.transpose(x_nchw, (0, 2, 3, 1))

    # (Cout, Cin, 3, 3) -> (9*Cin, Cout), K ordered (dy, dx, c) to match the kernel's im2col.
    w_mat = jnp.transpose(weight_oihw, (2, 3, 1, 0)).reshape(9 * Cin, Cout)
    b2d = bias.reshape(1, Cout).astype(jnp.float32)
    if mxu_dtype is not None:            # small weights: cast once; activations cast in-kernel
        w_mat = w_mat.astype(mxu_dtype)

    flops = 2 * N * H * W * Cout * 9 * Cin
    out_bytes = N * H * W * Cout * jnp.dtype(out_dtype).itemsize
    w_bytes = w_mat.size * jnp.dtype(w_mat.dtype).itemsize + b2d.size * 4

    fused_ok = (tile_h is None and
                _working_set_bytes(H, W, Cin, Cout, in_isz, fused_pad=True) <= _VMEM_BUDGET)

    if fused_ok:
        # Fast path: whole image per grid step, halo built in VMEM (no jnp.pad HBM round trip).
        kernel = functools.partial(_conv3x3_fused_pad_kernel,
                                   use_refl=use_refl, mxu_dtype=mxu_dtype)
        cost = pl.CostEstimate(flops=flops, transcendentals=0,
                               bytes_accessed=N * H * W * Cin * in_isz + w_bytes + out_bytes)
        out_nhwc = pl.pallas_call(
            kernel,
            out_shape=jax.ShapeDtypeStruct((N, H, W, Cout), out_dtype),
            grid=(N,),
            in_specs=[
                pl.BlockSpec((1, H, W, Cin), lambda n: (n, 0, 0, 0)),
                pl.BlockSpec((9 * Cin, Cout), lambda n: (0, 0)),   # weights: VMEM resident
                pl.BlockSpec((1, Cout), lambda n: (0, 0)),         # bias:    VMEM resident
            ],
            out_specs=pl.BlockSpec((1, H, W, Cout), lambda n: (n, 0, 0, 0)),
            compiler_params=pltpu.CompilerParams(
                dimension_semantics=("parallel",),                 # batch shards across TCs
                vmem_limit_bytes=_VMEM_LIMIT),
            cost_estimate=cost,
        )(x_nhwc, w_mat, b2d)
        return jnp.transpose(out_nhwc, (0, 3, 1, 2))

    # H-tiled halo path: pad once in HBM, stream overlapping (tile_h + 2)-row windows so
    # Pallas double-buffers HBM<->VMEM DMAs and overlaps them with MXU compute.
    pad_mode = "reflect" if use_refl else "constant"
    x_pad = jnp.pad(x_nhwc, ((0, 0), (1, 1), (1, 1), (0, 0)), mode=pad_mode)

    if tile_h is None:
        tile_h = _pick_tile_h(H, W, Cin, Cout, in_isz)
    assert H % tile_h == 0, f"tile_h={tile_h} must divide H={H}"
    n_h_tiles = H // tile_h
    Wp = W + 2

    kernel = functools.partial(_conv3x3_halo_kernel, mxu_dtype=mxu_dtype)
    cost = pl.CostEstimate(flops=flops, transcendentals=0,
                           bytes_accessed=N * (H + 2) * Wp * Cin * in_isz + w_bytes + out_bytes)
    out_nhwc = pl.pallas_call(
        kernel,
        out_shape=jax.ShapeDtypeStruct((N, H, W, Cout), out_dtype),
        grid=(N, n_h_tiles),
        in_specs=[
            # Halo'd input rows: pl.Element => the index_map returns an *element* offset on
            # the padded-H axis, so consecutive blocks overlap by the 2-row conv halo.
            pl.BlockSpec((1, pl.Element(tile_h + 2), Wp, Cin),
                         lambda n, i: (n, i * tile_h, 0, 0)),
            pl.BlockSpec((9 * Cin, Cout), lambda n, i: (0, 0)),    # weights: VMEM resident
            pl.BlockSpec((1, Cout), lambda n, i: (0, 0)),          # bias:    VMEM resident
        ],
        out_specs=pl.BlockSpec((1, tile_h, W, Cout), lambda n, i: (n, i, 0, 0)),
        compiler_params=pltpu.CompilerParams(
            dimension_semantics=("parallel", "parallel"),          # shard grid over both TCs
            vmem_limit_bytes=_VMEM_LIMIT),
        cost_estimate=cost,
    )(x_pad, w_mat, b2d)
    return jnp.transpose(out_nhwc, (0, 3, 1, 2))


# ----------------------------------------------------------------------------------------
# Reference + self-test
# ----------------------------------------------------------------------------------------
def _reference_conv3x3(x_nchw, weight_oihw, bias, *, use_refl=True):
    pad_mode = "reflect" if use_refl else "constant"
    x_pad = jnp.pad(x_nchw, ((0, 0), (0, 0), (1, 1), (1, 1)), mode=pad_mode)
    out = lax.conv_general_dilated(
        x_pad, weight_oihw, window_strides=(1, 1), padding="VALID",
        dimension_numbers=("NCHW", "OIHW", "NCHW"),
        precision=lax.Precision.HIGHEST)
    return out + bias.reshape(1, -1, 1, 1)


if __name__ == "__main__":
    # Small shapes consistent with the module: NCHW input.
    N, Cin, H, W = 2, 4, 16, 16
    Cout = 8

    key = jax.random.PRNGKey(0)
    kx, kw, kb = jax.random.split(key, 3)

    x = jax.random.normal(kx, (N, Cin, H, W), dtype=jnp.float32)

    # Deterministic Kaiming-uniform-style init (as nn.Conv2d does by default).
    fan_in = Cin * 3 * 3
    bound = 1.0 / (fan_in ** 0.5)
    weight = jax.random.uniform(kw, (Cout, Cin, 3, 3), jnp.float32, -bound, bound)
    bias = jax.random.uniform(kb, (Cout,), jnp.float32, -bound, bound)

    ref_refl = _reference_conv3x3(x, weight, bias, use_refl=True)
    ref_zero = _reference_conv3x3(x, weight, bias, use_refl=False)

    # 1) Fused-padding whole-image path (default), reflection padding (module default).
    out = jax.block_until_ready(conv3x3_pallas(x, weight, bias, use_refl=True))
    assert out.shape == (N, Cout, H, W)
    assert jnp.allclose(out, ref_refl, atol=1e-4, rtol=1e-4)

    # 2) Fused-padding path, zero padding (use_refl=False branch of the module).
    out_z = jax.block_until_ready(conv3x3_pallas(x, weight, bias, use_refl=False))
    assert jnp.allclose(out_z, ref_zero, atol=1e-4, rtol=1e-4)

    # 3) Forced H-tiling (2 halo'd tiles of 8 rows): Element-window pipelined path, reflect.
    out_t = jax.block_until_ready(conv3x3_pallas(x, weight, bias, use_refl=True, tile_h=8))
    assert jnp.allclose(out_t, ref_refl, atol=1e-4, rtol=1e-4)

    # 4) Tiled path, zero padding.
    out_tz = jax.block_until_ready(conv3x3_pallas(x, weight, bias, use_refl=False, tile_h=8))
    assert jnp.allclose(out_tz, ref_zero, atol=1e-4, rtol=1e-4)

    # 5) bf16 MXU operands (v6e/v7x fast path), f32 accumulation/output — both paths.
    out_bf = jax.block_until_ready(
        conv3x3_pallas(x, weight, bias, use_refl=True, mxu_dtype=jnp.bfloat16))
    assert jnp.allclose(out_bf, ref_refl, atol=5e-2, rtol=5e-2)
    out_bft = jax.block_until_ready(
        conv3x3_pallas(x, weight, bias, use_refl=True, tile_h=8, mxu_dtype=jnp.bfloat16))
    assert jnp.allclose(out_bft, ref_refl, atol=5e-2, rtol=5e-2)

    print("KERNEL_OK")
</pallas_src>

<mosaic_0001>
module attributes {stable_mosaic.version = 11 : i64} {
  func.func @_conv3x3_fused_pad_kernel(%arg0: i32, %arg1: memref<1x16x16x4xf32, #tpu.memory_space<vmem>>, %arg2: memref<36x8xf32, #tpu.memory_space<vmem>>, %arg3: memref<1x8xf32, #tpu.memory_space<vmem>>, %arg4: memref<1x16x16x8xf32, #tpu.memory_space<vmem>>) attributes {dimension_semantics = [#tpu.dimension_semantics<parallel>], iteration_bounds = array<i64: 2>, scalar_prefetch = 0 : i64, scratch_operands = 0 : i64, tpu.core_type = #tpu.core_type<tc>, window_params = [{transform_indices = @transform_0, window_bounds = array<i64: 1, 16, 16, 4>}, {pipeline_mode = #tpu.pipeline_mode<synchronous>, transform_indices = @transform_1, window_bounds = array<i64: 36, 8>}, {pipeline_mode = #tpu.pipeline_mode<synchronous>, transform_indices = @transform_2, window_bounds = array<i64: 1, 8>}, {transform_indices = @transform_3, window_bounds = array<i64: 1, 16, 16, 8>}]} {
    %c0 = arith.constant 0 : index
    %c0_0 = arith.constant 0 : index
    %c0_1 = arith.constant 0 : index
    %c0_2 = arith.constant 0 : index
    %0 = vector.load %arg1[%c0, %c0_0, %c0_1, %c0_2] : memref<1x16x16x4xf32, #tpu.memory_space<vmem>>, vector<1x16x16x4xf32>
    %1 = vector.shape_cast %0 : vector<1x16x16x4xf32> to vector<16x16x4xf32>
    %2 = vector.extract_strided_slice %1 {offsets = [0, 1, 0], sizes = [16, 1, 4], strides = [1, 1, 1]} : vector<16x16x4xf32> to vector<16x1x4xf32>
    %3 = vector.extract_strided_slice %1 {offsets = [0, 14, 0], sizes = [16, 1, 4], strides = [1, 1, 1]} : vector<16x16x4xf32> to vector<16x1x4xf32>
    %4 = tpu.concatenate %2, %1, %3 in 1 : vector<16x1x4xf32>, vector<16x16x4xf32>, vector<16x1x4xf32> -> vector<16x18x4xf32>
    %5 = vector.extract_strided_slice %4 {offsets = [1, 0, 0], sizes = [1, 18, 4], strides = [1, 1, 1]} : vector<16x18x4xf32> to vector<1x18x4xf32>
    %6 = vector.extract_strided_slice %4 {offsets = [14, 0, 0], sizes = [1, 18, 4], strides = [1, 1, 1]} : vector<16x18x4xf32> to vector<1x18x4xf32>
    %7 = tpu.concatenate %5, %4, %6 in 0 : vector<1x18x4xf32>, vector<16x18x4xf32>, vector<1x18x4xf32> -> vector<18x18x4xf32>
    %8 = vector.extract_strided_slice %7 {offsets = [0, 0, 0], sizes = [18, 16, 4], strides = [1, 1, 1]} : vector<18x18x4xf32> to vector<18x16x4xf32>
    %9 = vector.extract_strided_slice %7 {offsets = [0, 1, 0], sizes = [18, 16, 4], strides = [1, 1, 1]} : vector<18x18x4xf32> to vector<18x16x4xf32>
    %10 = vector.extract_strided_slice %7 {offsets = [0, 2, 0], sizes = [18, 16, 4], strides = [1, 1, 1]} : vector<18x18x4xf32> to vector<18x16x4xf32>
    %11 = vector.extract_strided_slice %8 {offsets = [0, 0, 0], sizes = [16, 16, 4], strides = [1, 1, 1]} : vector<18x16x4xf32> to vector<16x16x4xf32>
    %12 = vector.extract_strided_slice %9 {offsets = [0, 0, 0], sizes = [16, 16, 4], strides = [1, 1, 1]} : vector<18x16x4xf32> to vector<16x16x4xf32>
    %13 = vector.extract_strided_slice %10 {offsets = [0, 0, 0], sizes = [16, 16, 4], strides = [1, 1, 1]} : vector<18x16x4xf32> to vector<16x16x4xf32>
    %14 = vector.extract_strided_slice %8 {offsets = [1, 0, 0], sizes = [16, 16, 4], strides = [1, 1, 1]} : vector<18x16x4xf32> to vector<16x16x4xf32>
    %15 = vector.extract_strided_slice %9 {offsets = [1, 0, 0], sizes = [16, 16, 4], strides = [1, 1, 1]} : vector<18x16x4xf32> to vector<16x16x4xf32>
    %16 = vector.extract_strided_slice %10 {offsets = [1, 0, 0], sizes = [16, 16, 4], strides = [1, 1, 1]} : vector<18x16x4xf32> to vector<16x16x4xf32>
    %17 = vector.extract_strided_slice %8 {offsets = [2, 0, 0], sizes = [16, 16, 4], strides = [1, 1, 1]} : vector<18x16x4xf32> to vector<16x16x4xf32>
    %18 = vector.extract_strided_slice %9 {offsets = [2, 0, 0], sizes = [16, 16, 4], strides = [1, 1, 1]} : vector<18x16x4xf32> to vector<16x16x4xf32>
    %19 = vector.extract_strided_slice %10 {offsets = [2, 0, 0], sizes = [16, 16, 4], strides = [1, 1, 1]} : vector<18x16x4xf32> to vector<16x16x4xf32>
    %20 = tpu.concatenate %11, %12, %13, %14, %15, %16, %17, %18, %19 in 2 : vector<16x16x4xf32>, vector<16x16x4xf32>, vector<16x16x4xf32>, vector<16x16x4xf32>, vector<16x16x4xf32>, vector<16x16x4xf32>, vector<16x16x4xf32>, vector<16x16x4xf32>, vector<16x16x4xf32> -> vector<16x16x36xf32>
    %21 = vector.shape_cast %20 : vector<16x16x36xf32> to vector<256x36xf32>
    %c0_3 = arith.constant 0 : index
    %c0_4 = arith.constant 0 : index
    %22 = vector.load %arg2[%c0_3, %c0_4] : memref<36x8xf32, #tpu.memory_space<vmem>>, vector<36x8xf32>
    %cst = arith.constant dense<0.000000e+00> : vector<256x8xf32>
    %23 = tpu.matmul %21, %22, %cst {dimension_numbers = #tpu.dot_dimension_numbers<[1], [0], [0], [1], [0, 0, 1, 1], [], []>} : vector<256x36xf32>, vector<36x8xf32>, vector<256x8xf32> -> vector<256x8xf32>
    %c0_5 = arith.constant 0 : index
    %c0_6 = arith.constant 0 : index
    %24 = vector.load %arg3[%c0_5, %c0_6] : memref<1x8xf32, #tpu.memory_space<vmem>>, vector<1x8xf32>
    %25 = vector.broadcast %24 : vector<1x8xf32> to vector<256x8xf32>
    %26 = arith.addf %23, %25 : vector<256x8xf32>
    %27 = vector.shape_cast %26 : vector<256x8xf32> to vector<16x16x8xf32>
    %c0_7 = arith.constant 0 : index
    %c0_8 = arith.constant 0 : index
    %c0_9 = arith.constant 0 : index
    %c0_10 = arith.constant 0 : index
    %28 = vector.load %arg4[%c0_7, %c0_8, %c0_9, %c0_10] : memref<1x16x16x8xf32, #tpu.memory_space<vmem>>, vector<1x16x16x8xf32>
    %29 = vector.shape_cast %28 : vector<1x16x16x8xf32> to vector<16x16x8xf32>
    %30 = vector.shape_cast %27 : vector<16x16x8xf32> to vector<1x16x16x8xf32>
    tpu.vector_store %arg4[%c0_7, %c0_8, %c0_9, %c0_10], %30 {strides = array<i32>} : memref<1x16x16x8xf32, #tpu.memory_space<vmem>>, vector<1x16x16x8xf32>,
    return
  }
  func.func @transform_0(%arg0: i32) -> (i32, i32, i32, i32) {
    %c0_i32 = arith.constant 0 : i32
    %c0_i32_0 = arith.constant 0 : i32
    %c0_i32_1 = arith.constant 0 : i32
    %c0_i32_2 = arith.constant 0 : i32
    return %arg0, %c0_i32, %c0_i32_0, %c0_i32_1 : i32, i32, i32, i32
  }
  func.func @transform_1(%arg0: i32) -> (i32, i32) {
    %c0_i32 = arith.constant 0 : i32
    %c0_i32_0 = arith.constant 0 : i32
    %c0_i32_1 = arith.constant 0 : i32
    return %c0_i32, %c0_i32_0 : i32, i32
  }
  func.func @transform_2(%arg0: i32) -> (i32, i32) {
    %c0_i32 = arith.constant 0 : i32
    %c0_i32_0 = arith.constant 0 : i32
    %c0_i32_1 = arith.constant 0 : i32
    return %c0_i32, %c0_i32_0 : i32, i32
  }
  func.func @transform_3(%arg0: i32) -> (i32, i32, i32, i32) {
    %c0_i32 = arith.constant 0 : i32
    %c0_i32_0 = arith.constant 0 : i32
    %c0_i32_1 = arith.constant 0 : i32
    %c0_i32_2 = arith.constant 0 : i32
    return %arg0, %c0_i32, %c0_i32_0, %c0_i32_1 : i32, i32, i32, i32
  }
}

</mosaic_0001>

<bundles_post_ra>
// kernel: tpu_custom_call.1
= control target key start
LH: loop header
LB: loop body
LE: loop exit
PB: predicated region body
PF: predicated region fallthrough
CT: control target
= control target key end

     0   :  { %s2252_s12 = smov 0   ;;  %s4028_s0 = inlined_call_operand.vmem [shape: f32[2,16,16,4], index: 0, kind: input, shape index: {}]   ;;  %s4029_s1 = inlined_call_operand.vmem [shape: f32[36,8], index: 1, kind: input, shape index: {}]   ;;  %s4030_s2 = inlined_call_operand.vmem [shape: f32[1,8], index: 2, kind: input, shape index: {}]   ;;  %s4031_s3 = inlined_call_operand.vmem [shape: f32[2,16,16,8], index: 3, kind: output, shape index: {}]  }
   0x1 LB: > { %s2044_s13 = sadd.s32 4294967295, %s2222_s12   ;;  %p2048_p0 = scmp.ge.s32.totalorder %s2222_s12, 1  ;;  %s2222_s12 = sphi %s2252_s12, %s13_s12  }
   0x2   : > { %p137_p1 = scmp.lt.s32.totalorder %s2222_s12, 3 }
   0x4   : > { %p138_p2 = pnand %p2048_p0, %p137_p1 }
   0x6   : > { %141 = sbr.rel (%p138_p2) target bundleno = 846 (0x34e), region = 32 }
   0xd   : > { %p161_p3 = scmp.lt.s32.totalorder %s2044_s13, 1  ;;  %vm267_vm0 = vcmask 1040384   ;;  %vm457_vm1 = vcmask 1046528   ;;  %s2224_s18 = smov 4   ;;  %vm623_vm2 = vcmask 1045504   ;;  %vm1728_vm3 = vcmask 1043456  }
   0xe   : > { %s2225_s19 = smov 8   ;;  %s2226_s20 = smov 12   ;;  %vm1359_vm4 = vcmask 31744   ;;  %vm1390_vm5 = vcmask 64512   ;;  %vm1421_vm6 = vcmask 97280   ;;  %vm1454_vm7 = vcmask 130048  }
   0xf   : > { %s4345_s13 = smov (!%p161_p3, %s2044_s13), 1  ;;  %s2227_s21 = smov 16   ;;  %vm1487_vm8 = vcmask 162816   ;;  %vm1520_vm9 = vcmask 195584   ;;  %vm1553_vm10 = vcmask 228352   ;;  %vm1586_vm11 = vcmask 261120  }
  0x10   : > { %s2089_s14 = sshll.u32 %s4345_s13, 8  ;;  %s2228_s22 = smov 20   ;;  %vm1631_vm12 = vcmask 293888  }
  0x11   : > { %s2268_s17 = scalar_lea.vmem %s4028_s0, %s2089_s14  ;;  %s2229_s23 = smov 24  }
  0x12   : > { %v173_v0 = vld [vmem:[%s2268_s17 + $0x10] sm:$0xff]  ;;  %v174_v1 = vld [vmem:[%s2268_s17 + $0x18] sm:$0xff]  ;;  %v171_v2 = vld [vmem:[%s2268_s17] sm:$0xff]  ;;  %s2230_s24 = smov 28   ;;  %s2231_s8 = smov 32  }
  0x13   : > { %v220_v3 = vrot.slane %v173_v0, 1  ;;  %v271_v4 = vrot.slane %v173_v0, 7  ;;  %v272_v5 = vrot.slane %v174_v1, 7  ;;  %v172_v6 = vld [vmem:[%s2268_s17 + $0x8] sm:$0xff]  ;;  %v219_v7 = vrot.slane %v171_v2, 1  ;;  %v175_v8 = vld [vmem:[%s2268_s17 + $0x20] sm:$0xff]  ;;  %s3863_s16 = scalar_lea.vmem %s4031_s3, %s2089_s14 }
  0x14   : > { %v268_v9 = vrot.slane %v171_v2, 7  ;;  %v269_v10 = vrot.slane %v172_v6, 7  ;;  %v364_v11 = vrot.slane %v174_v1, 5  ;;  %v363_v12 = vrot.slane %v172_v6, 5  ;;  %v176_v15 = vld [vmem:[%s2268_s17 + $0x28] sm:$0xff]  ;;  %v177_v22 = vld [vmem:[%s2268_s17 + $0x30] sm:$0xff] }
  0x15   : > { %v2276_v13 = vsel %vm267_vm0, %v271_v4, %v272_v5  ;;  %v2279_v14 = vsel %vm267_vm0, %v220_v3, %v271_v4  ;;  %v221_v16 = vrot.slane %v175_v8, 1  ;;  %v274_v17 = vrot.slane %v175_v8, 7  ;;  %v178_v31 = vld [vmem:[%s2268_s17 + $0x38] sm:$0xff]  ;;  %v179_v36 = vld [vmem:[%s2268_s17 + $0x40] sm:$0xff]  ;;  %v180_v41 = vld [vmem:[%s2268_s17 + $0x48] sm:$0xff] }
  0x16   : > { %v458_v18 = vrot.slane %v2279_v14, 1  ;;  %v459_v19 = vrot.slane %v2276_v13, 1  ;;  %v2285_v20 = vsel %vm267_vm0, %v268_v9, %v269_v10  ;;  %v2288_v21 = vsel %vm267_vm0, %v219_v7, %v268_v9  ;;  %v181_v54 = vld [vmem:[%s2268_s17 + $0x50] sm:$0xff]  ;;  %v182_v59 = vld [vmem:[%s2268_s17 + $0x58] sm:$0xff]  ;;  %v183_v0 = vld [vmem:[%s2268_s17 + $0x60] sm:$0xff] }
  0x17   : > { %4155 = vst [vmem:[#allocation2_spill] sm:$0xff] %v2285_v20  ;;  %4156 = vst [vmem:[#allocation3_spill] sm:$0xff] %v2288_v21  ;;  %v463_v23 = vrot.slane %v2288_v21, 1  ;;  %v464_v24 = vrot.slane %v2285_v20, 1  ;;  %v2294_v25 = vsel %vm267_vm0, %v272_v5, %v364_v11  ;;  %v2297_v26 = vsel %vm267_vm0, %v269_v10, %v363_v12  ;;  %v184_v4 = vld [vmem:[%s2268_s17 + $0x68] sm:$0xff] }
  0x18   : > { %v2300_v27 = vsel %vm457_vm1, %v458_v18, %v459_v19  ;;  %v461_v28 = vrot.slane %v2294_v25, 1  ;;  %v466_v29 = vrot.slane %v2297_v26, 1  ;;  %v275_v30 = vrot.slane %v176_v15, 7 }
  0x19   : > { %533 = vrot.lane.b32.xlu0 %v2300_v27, %s2224_s18  ;;  %v2308_v32 = vsel %vm457_vm1, %v463_v23, %v464_v24  ;;  %v2311_v33 = vsel %vm267_vm0, %v221_v16, %v274_v17  ;;  %v365_v34 = vrot.slane %v176_v15, 5  ;;  %v222_v35 = vrot.slane %v177_v22, 1  ;;  %v186_v23 = vld [vmem:[%s2268_s17 + $0x78] sm:$0xff] }
  0x1a   : > { %537 = vrot.lane.b32.xlu1 %v2308_v32, %s2224_s18  ;;  %v2317_v37 = vsel %vm457_vm1, %v459_v19, %v461_v28  ;;  %v2320_v38 = vsel %vm457_vm1, %v464_v24, %v466_v29  ;;  %v2323_v39 = vsel %vm267_vm0, %v274_v17, %v275_v30  ;;  %v468_v40 = vrot.slane %v2311_v33, 1 }
  0x1b   : > { %4157 = vst [vmem:[#allocation4_spill] sm:$0xff] %v2317_v37  ;;  %v469_v42 = vrot.slane %v2323_v39, 1  ;;  %v2329_v43 = vsel %vm267_vm0, %v275_v30, %v365_v34  ;;  %v277_v44 = vrot.slane %v177_v22, 7  ;;  %v278_v45 = vrot.slane %v178_v31, 7  ;;  %v185_v22 = vld [vmem:[%s2268_s17 + $0x70] sm:$0xff]  ;;  %v187_v30 = vld [vmem:[%s2268_s17 + $0x80] sm:$0xff] }
  0x1c   : > { %v471_v46 = vrot.slane %v2329_v43, 1  ;;  %v366_v47 = vrot.slane %v178_v31, 5  ;;  %v223_v48 = vrot.slane %v179_v36, 1  ;;  %v280_v49 = vrot.slane %v179_v36, 7 }
  0x1d   : > { %535 = vrot.lane.b32.xlu0 %v2317_v37, %s2224_s18  ;;  %v2335_v50 = vsel %vm457_vm1, %v468_v40, %v469_v42  ;;  %v2338_v51 = vsel %vm267_vm0, %v277_v44, %v278_v45  ;;  %v2341_v52 = vsel %vm267_vm0, %v222_v35, %v277_v44  ;;  %v281_v53 = vrot.slane %v180_v41, 7  ;;  %v188_v40 = vld [vmem:[%s2268_s17 + $0x88] sm:$0xff] }
  0x1e   : > { %4158 = vst [vmem:[#allocation5_spill] sm:$0xff] %v2335_v50  ;;  %539 = vrot.lane.b32.xlu1 %v2320_v38, %s2224_s18  ;;  %v2347_v55 = vsel %vm457_vm1, %v469_v42, %v471_v46  ;;  %v473_v56 = vrot.slane %v2341_v52, 1  ;;  %v474_v57 = vrot.slane %v2338_v51, 1  ;;  %v2352_v58 = vsel %vm267_vm0, %v278_v45, %v366_v47 }
  0x1f   : > { %4159 = vst [vmem:[#allocation6_spill] sm:$0xff] %v2347_v55  ;;  %v476_v60 = vrot.slane %v2352_v58, 1  ;;  %v2357_v61 = vsel %vm267_vm0, %v280_v49, %v281_v53  ;;  %v2360_v62 = vsel %vm267_vm0, %v223_v48, %v280_v49  ;;  %v367_v63 = vrot.slane %v180_v41, 5 }
  0x20   : > { %v2364_v1 = vsel %vm457_vm1, %v473_v56, %v474_v57  ;;  %v478_v2 = vrot.slane %v2360_v62, 1  ;;  %v224_v3 = vrot.slane %v181_v54, 1  ;;  %v479_v5 = vrot.slane %v2357_v61, 1 }
  0x21   : > { %4160 = vst [vmem:[#allocation7_spill] sm:$0xff] %v2364_v1  ;;  %541 = vrot.lane.b32.xlu0 %v2335_v50, %s2224_s18  ;;  %v2372_v6 = vsel %vm267_vm0, %v281_v53, %v367_v63  ;;  %v283_v7 = vrot.slane %v181_v54, 7  ;;  %v284_v8 = vrot.slane %v182_v59, 7  ;;  %v2377_v9 = vsel %vm457_vm1, %v474_v57, %v476_v60  ;;  %v190_v60 = vld [vmem:[%s2268_s17 + $0x98] sm:$0xff]  ;;  %v199_v50 = vld [vmem:[%s2268_s17 + $0xe0] sm:$0xff] }
  0x22   : > { %543 = vrot.lane.b32.xlu1 %v2347_v55, %s2224_s18  ;;  %4161 = vst [vmem:[#allocation8_spill] sm:$0xff] %v2377_v9  ;;  %v481_v10 = vrot.slane %v2372_v6, 1  ;;  %v368_v11 = vrot.slane %v182_v59, 5  ;;  %v225_v12 = vrot.slane %v183_v0, 1  ;;  %v286_v17 = vrot.slane %v183_v0, 7  ;;  %v189_v59 = vld [vmem:[%s2268_s17 + $0x90] sm:$0xff] }
  0x23   : > { %v2381_v15 = vsel %vm267_vm0, %v283_v7, %v284_v8  ;;  %v2384_v16 = vsel %vm267_vm0, %v224_v3, %v283_v7  ;;  %v287_v18 = vrot.slane %v184_v4, 7  ;;  %v2394_v24 = vsel %vm457_vm1, %v478_v2, %v479_v5 }
  0x24   : > { %v2387_v19 = vsel %vm267_vm0, %v284_v8, %v368_v11  ;;  %4162 = vst [vmem:[#allocation9_spill] sm:$0xff] %v2394_v24  ;;  %v2397_v28 = vsel %vm457_vm1, %v479_v5, %v481_v10  ;;  %v369_v29 = vrot.slane %v184_v4, 5  ;;  %v483_v31 = vrot.slane %v2384_v16, 1 }
  0x25   : > { %545 = vrot.lane.b32.xlu0 %v2364_v1, %s2224_s18  ;;  %4163 = vst [vmem:[#allocation10_spill] sm:$0xff] %v2397_v28  ;;  %v484_v34 = vrot.slane %v2381_v15, 1  ;;  %v486_v35 = vrot.slane %v2387_v19, 1  ;;  %v2406_v36 = vsel %vm267_vm0, %v286_v17, %v287_v18  ;;  %v2410_v41 = vsel %vm267_vm0, %v225_v12, %v286_v17  ;;  %v191_v17 = vld [vmem:[%s2268_s17 + $0xa0] sm:$0xff] }
  0x26   : > { %547 = vrot.lane.b32.xlu1 %v2377_v9, %s2224_s18  ;;  %v226_v42 = vrot.slane %v185_v22, 1  ;;  %v289_v44 = vrot.slane %v185_v22, 7  ;;  %v290_v45 = vrot.slane %v186_v23, 7  ;;  %v2413_v46 = vsel %vm267_vm0, %v287_v18, %v369_v29  ;;  %v192_v29 = vld [vmem:[%s2268_s17 + $0xa8] sm:$0xff]  ;;  %v198_v9 = vld [vmem:[%s2268_s17 + $0xd8] sm:$0xff] }
  0x27   : > { %v370_v47 = vrot.slane %v186_v23, 5  ;;  %v227_v48 = vrot.slane %v187_v30, 1  ;;  %v292_v49 = vrot.slane %v187_v30, 7  ;;  %v293_v53 = vrot.slane %v188_v40, 7 }
  0x28   : > { %v2420_v54 = vsel %vm457_vm1, %v483_v31, %v484_v34  ;;  %v488_v56 = vrot.slane %v2410_v41, 1  ;;  %v489_v57 = vrot.slane %v2406_v36, 1  ;;  %v2427_v63 = vsel %vm457_vm1, %v484_v34, %v486_v35 }
  0x29   : > { %549 = vrot.lane.b32.xlu0 %v2394_v24, %s2224_s18  ;;  %4164 = vst [vmem:[#allocation11_spill] sm:$0xff] %v2420_v54  ;;  %4165 = vst [vmem:[#allocation12_spill] sm:$0xff] %v2427_v63  ;;  %v491_v0 = vrot.slane %v2413_v46, 1  ;;  %v2431_v2 = vsel %vm267_vm0, %v289_v44, %v290_v45  ;;  %v2434_v3 = vsel %vm267_vm0, %v226_v42, %v289_v44  ;;  %v371_v7 = vrot.slane %v188_v40, 5  ;;  %v197_v24 = vld [vmem:[%s2268_s17 + $0xd0] sm:$0xff] }
  0x2a   : > { %551 = vrot.lane.b32.xlu1 %v2397_v28, %s2224_s18  ;;  %4166 = vst [vmem:[#allocation13_spill] sm:$0xff] %v2431_v2  ;;  %4167 = vst [vmem:[#allocation14_spill] sm:$0xff] %v2434_v3  ;;  %v2437_v4 = vsel %vm267_vm0, %v290_v45, %v370_v47  ;;  %v2440_v5 = vsel %vm267_vm0, %v227_v48, %v292_v49  ;;  %v2445_v8 = vsel %vm267_vm0, %v292_v49, %v293_v53 }
  0x2b   : > { %4168 = vst [vmem:[#allocation15_spill] sm:$0xff] %v2440_v5  ;;  %4169 = vst [vmem:[#allocation16_spill] sm:$0xff] %v2445_v8  ;;  %v228_v10 = vrot.slane %v189_v59, 1  ;;  %v295_v11 = vrot.slane %v189_v59, 7  ;;  %v296_v12 = vrot.slane %v190_v60, 7  ;;  %v2451_v18 = vsel %vm457_vm1, %v488_v56, %v489_v57 }
  0x2c   : > { %4170 = vst [vmem:[#allocation17_spill] sm:$0xff] %v2451_v18  ;;  %v493_v22 = vrot.slane %v2434_v3, 1  ;;  %v494_v23 = vrot.slane %v2431_v2, 1  ;;  %v2457_v30 = vsel %vm457_vm1, %v489_v57, %v491_v0  ;;  %v496_v31 = vrot.slane %v2437_v4, 1  ;;  %v194_v0 = vld [vmem:[%s2268_s17 + $0xb8] sm:$0xff] }
  0x2d   : > { %553 = vrot.lane.b32.xlu0 %v2420_v54, %s2224_s18  ;;  %4171 = vst [vmem:[#allocation18_spill] sm:$0xff] %v2457_v30  ;;  %v498_v34 = vrot.slane %v2440_v5, 1  ;;  %v499_v35 = vrot.slane %v2445_v8, 1  ;;  %v2463_v40 = vsel %vm267_vm0, %v293_v53, %v371_v7  ;;  %v372_v42 = vrot.slane %v190_v60, 5  ;;  %v193_v60 = vld [vmem:[%s2268_s17 + $0xb0] sm:$0xff] }
  0x2e   : > { %555 = vrot.lane.b32.xlu1 %v2427_v63, %s2224_s18  ;;  %v229_v44 = vrot.slane %v191_v17, 1  ;;  %v2468_v45 = vsel %vm267_vm0, %v295_v11, %v296_v12  ;;  %v2471_v47 = vsel %vm267_vm0, %v228_v10, %v295_v11  ;;  %v298_v48 = vrot.slane %v191_v17, 7  ;;  %v196_v63 = vld [vmem:[%s2268_s17 + $0xc8] sm:$0xff] }
  0x2f   : > { %v299_v49 = vrot.slane %v192_v29, 7  ;;  %v2476_v56 = vsel %vm457_vm1, %v493_v22, %v494_v23  ;;  %v373_v53 = vrot.slane %v192_v29, 5  ;;  %v2479_v57 = vsel %vm457_vm1, %v494_v23, %v496_v31 }
  0x30   : > { %4172 = vst [vmem:[#allocation19_spill] sm:$0xff] %v2476_v56  ;;  %4173 = vst [vmem:[#allocation20_spill] sm:$0xff] %v2479_v57  ;;  %v501_v59 = vrot.slane %v2463_v40, 1  ;;  %v503_v7 = vrot.slane %v2471_v47, 1  ;;  %v504_v10 = vrot.slane %v2468_v45, 1  ;;  %v2487_v11 = vsel %vm267_vm0, %v296_v12, %v372_v42 }
  0x31   : > { %557 = vrot.lane.b32.xlu0 %v2451_v18, %s2224_s18  ;;  %v2492_v17 = vsel %vm457_vm1, %v498_v34, %v499_v35  ;;  %v2495_v22 = vsel %vm267_vm0, %v298_v48, %v299_v49  ;;  %v2498_v23 = vsel %vm267_vm0, %v229_v44, %v298_v48  ;;  %v2503_v29 = vsel %vm267_vm0, %v299_v49, %v373_v53 }
  0x32   : > { %559 = vrot.lane.b32.xlu1 %v2457_v30, %s2224_s18  ;;  %4174 = vst [vmem:[#allocation21_spill] sm:$0xff] %v2492_v17  ;;  %v230_v12 = vrot.slane %v193_v60, 1  ;;  %v301_v31 = vrot.slane %v193_v60, 7  ;;  %v302_v42 = vrot.slane %v194_v0, 7  ;;  %v195_v30 = vld [vmem:[%s2268_s17 + $0xc0] sm:$0xff]  ;;  %v506_v34 = vrot.slane %v2487_v11, 1 }
  0x33   : > { %v374_v18 = vrot.slane %v194_v0, 5  ;;  %v2512_v44 = vsel %vm457_vm1, %v503_v7, %v504_v10  ;;  %v508_v48 = vrot.slane %v2498_v23, 1  ;;  %v509_v49 = vrot.slane %v2495_v22, 1 }
  0x34   : > { %4176 = vst [vmem:[#allocation23_spill] sm:$0xff] %v2512_v44  ;;  %v511_v53 = vrot.slane %v2503_v29, 1  ;;  %v2525_v60 = vsel %vm267_vm0, %v230_v12, %v301_v31  ;;  %v304_v0 = vrot.slane %v195_v30, 7  ;;  %v305_v7 = vrot.slane %v196_v63, 7 }
  0x35   : > { %561 = vrot.lane.b32.xlu0 %v2476_v56, %s2224_s18  ;;  %v2507_v56 = vsel %vm457_vm1, %v499_v35, %v501_v59  ;;  %v231_v35 = vrot.slane %v195_v30, 1  ;;  %v2522_v59 = vsel %vm267_vm0, %v301_v31, %v302_v42  ;;  %4178 = vst [vmem:[#allocation25_spill] sm:$0xff] %v2525_v60  ;;  %v2531_v54 = vsel %vm267_vm0, %v302_v42, %v374_v18 }
  0x36   : > { %563 = vrot.lane.b32.xlu1 %v2479_v57, %s2224_s18  ;;  %4175 = vst [vmem:[#allocation22_spill] sm:$0xff] %v2507_v56  ;;  %4177 = vst [vmem:[#allocation24_spill] sm:$0xff] %v2522_v59  ;;  %v2528_v57 = vsel %vm457_vm1, %v504_v10, %v506_v34  ;;  %v375_v28 = vrot.slane %v196_v63, 5  ;;  %v2538_v1 = vsel %vm457_vm1, %v508_v48, %v509_v49  ;;  %v513_v30 = vrot.slane %v2525_v60, 1 }
  0x37   : > { %4179 = vst [vmem:[#allocation26_spill] sm:$0xff] %v2528_v57  ;;  %4180 = vst [vmem:[#allocation27_spill] sm:$0xff] %v2538_v1  ;;  %v514_v12 = vrot.slane %v2522_v59, 1  ;;  %v2545_v18 = vsel %vm457_vm1, %v509_v49, %v511_v53  ;;  %v516_v63 = vrot.slane %v2531_v54, 1  ;;  %v2549_v10 = vsel %vm267_vm0, %v304_v0, %v305_v7 }
  0x38   : > { %4181 = vst [vmem:[#allocation28_spill] sm:$0xff] %v2545_v18  ;;  %4182 = vst [vmem:[#allocation29_spill] sm:$0xff] %v2549_v10  ;;  %v2552_v31 = vsel %vm267_vm0, %v231_v35, %v304_v0  ;;  %v2555_v42 = vsel %vm267_vm0, %v305_v7, %v375_v28  ;;  %v232_v34 = vrot.slane %v197_v24, 1  ;;  %v307_v48 = vrot.slane %v197_v24, 7 }
  0x39   : > { %565 = vrot.lane.b32.xlu0 %v2492_v17, %s2224_s18  ;;  %4183 = vst [vmem:[#allocation30_spill] sm:$0xff] %v2552_v31  ;;  %v308_v55 = vrot.slane %v198_v9, 7  ;;  %v376_v37 = vrot.slane %v198_v9, 5  ;;  %v2562_v49 = vsel %vm457_vm1, %v513_v30, %v514_v12  ;;  %v518_v53 = vrot.slane %v2552_v31, 1 }
  0x3a   : > { %567 = vrot.lane.b32.xlu1 %v2507_v56, %s2224_s18  ;;  %4184 = vst [vmem:[#allocation31_spill] sm:$0xff] %v2562_v49  ;;  %v2568_v28 = vsel %vm457_vm1, %v514_v12, %v516_v63  ;;  %v519_v24 = vrot.slane %v2549_v10, 1  ;;  %v521_v35 = vrot.slane %v2555_v42, 1  ;;  %v233_v9 = vrot.slane %v199_v50, 1 }
  0x3b   : > { %4185 = vst [vmem:[#allocation32_spill] sm:$0xff] %v2568_v28  ;;  %v2573_v0 = vsel %vm267_vm0, %v307_v48, %v308_v55  ;;  %v2576_v7 = vsel %vm267_vm0, %v232_v34, %v307_v48  ;;  %v310_v30 = vrot.slane %v199_v50, 7 }
  0x3c   : > { %4186 = vst [vmem:[#allocation33_spill] sm:$0xff] %v2573_v0  ;;  %4187 = vst [vmem:[#allocation34_spill] sm:$0xff] %v2576_v7  ;;  %v2586_v12 = vsel %vm457_vm1, %v518_v53, %v519_v24  ;;  %v523_v63 = vrot.slane %v2576_v7, 1  ;;  %v524_v34 = vrot.slane %v2573_v0, 1  ;;  %v2591_v50 = vsel %vm457_vm1, %v519_v24, %v521_v35 }
  0x3d   : > { %569 = vrot.lane.b32.xlu0 %v2512_v44, %s2224_s18  ;;  %v2579_v44 = vsel %vm267_vm0, %v308_v55, %v376_v37  ;;  %4188 = vst [vmem:[#allocation35_spill] sm:$0xff] %v2586_v12  ;;  %4189 = vst [vmem:[#allocation36_spill] sm:$0xff] %v2591_v50 }
  0x3e   : > { %571 = vrot.lane.b32.xlu1 %v2528_v57, %s2224_s18  ;;  %v200_v57 = vld [vmem:[%s2268_s17 + $0xe8] sm:$0xff]  ;;  %v526_v37 = vrot.slane %v2579_v44, 1  ;;  %v2608_v53 = vsel %vm457_vm1, %v523_v63, %v524_v34 }
  0x3f   : > { %4192 = vst [vmem:[#allocation39_spill] sm:$0xff] %v2608_v53 }
  0x41   : > { %573 = vrot.lane.b32.xlu0 %v2538_v1, %s2224_s18  ;;  %v311_v1 = vrot.slane %v200_v57, 7 }
  0x42   : > { %575 = vrot.lane.b32.xlu1 %v2545_v18, %s2224_s18  ;;  %v377_v18 = vrot.slane %v200_v57, 5  ;;  %v2598_v57 = vsel %vm267_vm0, %v233_v9, %v310_v30 }
  0x43   : > { %v2595_v55 = vsel %vm267_vm0, %v310_v30, %v311_v1  ;;  %4191 = vst [vmem:[#allocation38_spill] sm:$0xff] %v2598_v57  ;;  %v528_v24 = vrot.slane %v2598_v57, 1  ;;  %v625_v30 = vrot.slane %v2276_v13, 2 }
  0x44   : > { %4190 = vst [vmem:[#allocation37_spill] sm:$0xff] %v2595_v55  ;;  %v2601_v48 = vsel %vm267_vm0, %v311_v1, %v377_v18  ;;  %v529_v35 = vrot.slane %v2595_v55, 1  ;;  %v624_v18 = vrot.slane %v2279_v14, 2 }
  0x45   : > { %577 = vrot.lane.b32.xlu0 %v2562_v49, %s2224_s18  ;;  %v531_v9 = vrot.slane %v2601_v48, 1 }
  0x46   : > { %579 = vrot.lane.b32.xlu1 %v2568_v28, %s2224_s18  ;;  %v2613_v28 = vsel %vm457_vm1, %v524_v34, %v526_v37  ;;  %v2621_v1 = vsel %vm457_vm1, %v528_v24, %v529_v35  ;;  %v627_v34 = vrot.slane %v2294_v25, 2  ;;  %v2634_v37 = vsel %vm623_vm2, %v624_v18, %v625_v30 }
  0x47   : > { %4193 = vst [vmem:[#allocation40_spill] sm:$0xff] %v2613_v28  ;;  %4194 = vst [vmem:[#allocation41_spill] sm:$0xff] %v2621_v1  ;;  %v2626_v63 = vsel %vm457_vm1, %v529_v35, %v531_v9  ;;  %v629_v24 = vrot.slane %v2288_v21, 2  ;;  %v632_v35 = vrot.slane %v2297_v26, 2  ;;  %v634_v9 = vrot.slane %v2311_v33, 2 }
  0x48   : > { %4195 = vst [vmem:[#allocation42_spill] sm:$0xff] %v2626_v63  ;;  %v635_v18 = vrot.slane %v2323_v39, 2 }
  0x49   : > { %581 = vrot.lane.b32.xlu0 %v2586_v12, %s2224_s18 }
  0x4a   : > { %583 = vrot.lane.b32.xlu1 %v2591_v50, %s2224_s18  ;;  %v2660_v26 = vsel %vm623_vm2, %v634_v9, %v635_v18  ;;  %v645_v9 = vrot.slane %v2357_v61, 2 }
  0x4d   : > { %585 = vrot.lane.b32.xlu0 %v2608_v53, %s2224_s18  ;;  %v2639_v53 = vsel %vm623_vm2, %v625_v30, %v627_v34  ;;  %v637_v30 = vrot.slane %v2329_v43, 2  ;;  %v639_v34 = vrot.slane %v2341_v52, 2 }
  0x4e   : > { %587 = vrot.lane.b32.xlu1 %v2613_v28, %s2224_s18  ;;  %v630_v28 = vrot.slane %v2285_v20, 2 }
  0x50   : > { %v2647_v25 = vsel %vm623_vm2, %v629_v24, %v630_v28  ;;  %v640_v24 = vrot.slane %v2338_v51, 2 }
  0x51   : > { %589 = vrot.lane.b32.xlu0 %v2621_v1, %s2224_s18  ;;  %v2665_v1 = vsel %vm623_vm2, %v635_v18, %v637_v30  ;;  %v647_v18 = vrot.slane %v2372_v6, 2  ;;  %v649_v30 = vrot.slane %v2384_v16, 2 }
  0x52   : > { %591 = vrot.lane.b32.xlu1 %v2626_v63, %s2224_s18  ;;  %v2652_v63 = vsel %vm623_vm2, %v630_v28, %v632_v35  ;;  %v642_v28 = vrot.slane %v2352_v58, 2  ;;  %v2673_v43 = vsel %vm623_vm2, %v639_v34, %v640_v24  ;;  %v644_v35 = vrot.slane %v2360_v62, 2 }
  0x53   : > { %4196 = vst [vmem:[#allocation43_spill] sm:$0xff] %v2673_v43  ;;  %v650_v34 = vrot.slane %v2381_v15, 2  ;;  %v2691_v12 = vsel %vm623_vm2, %v645_v9, %v647_v18  ;;  %v659_v18 = vrot.slane %v2434_v3, 2 }
  0x54   : > { %v2678_v50 = vsel %vm623_vm2, %v640_v24, %v642_v28  ;;  %v2686_v58 = vsel %vm623_vm2, %v644_v35, %v645_v9  ;;  %4199 = vst [vmem:[#allocation46_spill] sm:$0xff] %v2691_v12  ;;  %v652_v24 = vrot.slane %v2387_v19, 2  ;;  %v654_v28 = vrot.slane %v2410_v41, 2 }
  0x55   : > { %699 = vrot.lane.b32.xlu0 %v2634_v37, %s2225_s19  ;;  %4197 = vst [vmem:[#allocation44_spill] sm:$0xff] %v2678_v50  ;;  %4198 = vst [vmem:[#allocation45_spill] sm:$0xff] %v2686_v58  ;;  %v2699_v6 = vsel %vm623_vm2, %v649_v30, %v650_v34  ;;  %v655_v35 = vrot.slane %v2406_v36, 2  ;;  %v657_v9 = vrot.slane %v2413_v46, 2  ;;  %v660_v30 = vrot.slane %v2431_v2, 2 }
  0x56   : > { %701 = vrot.lane.b32.xlu1 %v2639_v53, %s2225_s19  ;;  %4200 = vst [vmem:[#allocation47_spill] sm:$0xff] %v2699_v6 }
  0x57   : > { %v2712_v19 = vsel %vm623_vm2, %v654_v28, %v655_v35  ;;  %v2725_v46 = vsel %vm623_vm2, %v659_v18, %v660_v30  ;;  %v665_v28 = vrot.slane %v2445_v8, 2  ;;  %v670_v18 = vrot.slane %v2468_v45, 2 }
  0x58   : > { %4202 = vst [vmem:[#allocation49_spill] sm:$0xff] %v2712_v19  ;;  %4204 = vst [vmem:[#allocation51_spill] sm:$0xff] %v2725_v46 }
  0x59   : > { %703 = vrot.lane.b32.xlu0 %v2647_v25, %s2225_s19 }
  0x5a   : > { %705 = vrot.lane.b32.xlu1 %v2652_v63, %s2225_s19 }
  0x5d   : > { %707 = vrot.lane.b32.xlu0 %v2660_v26, %s2225_s19 }
  0x5e   : > { %709 = vrot.lane.b32.xlu1 %v2665_v1, %s2225_s19 }
  0x61   : > { %711 = vrot.lane.b32.xlu0 %v2673_v43, %s2225_s19 }
  0x62   : > { %713 = vrot.lane.b32.xlu1 %v2678_v50, %s2225_s19  ;;  %v2704_v50 = vsel %vm623_vm2, %v650_v34, %v652_v24  ;;  %v662_v34 = vrot.slane %v2437_v4, 2  ;;  %v664_v24 = vrot.slane %v2440_v5, 2 }
  0x63   : > { %4201 = vst [vmem:[#allocation48_spill] sm:$0xff] %v2704_v50 }
  0x64   : > { %v2738_v4 = vsel %vm623_vm2, %v664_v24, %v665_v28  ;;  %v675_v24 = vrot.slane %v2495_v22, 2 }
  0x65   : > { %715 = vrot.lane.b32.xlu0 %v2686_v58, %s2225_s19  ;;  %4206 = vst [vmem:[#allocation53_spill] sm:$0xff] %v2738_v4 }
  0x66   : > { %717 = vrot.lane.b32.xlu1 %v2691_v12, %s2225_s19  ;;  %v2717_v12 = vsel %vm623_vm2, %v655_v35, %v657_v9  ;;  %v667_v35 = vrot.slane %v2463_v40, 2  ;;  %v669_v9 = vrot.slane %v2471_v47, 2 }
  0x67   : > { %4203 = vst [vmem:[#allocation50_spill] sm:$0xff] %v2717_v12 }
  0x68   : > { %v2751_v40 = vsel %vm623_vm2, %v669_v9, %v670_v18  ;;  %v680_v9 = vrot.slane %v2522_v59, 2 }
  0x69   : > { %719 = vrot.lane.b32.xlu0 %v2699_v6, %s2225_s19 }
  0x6a   : > { %721 = vrot.lane.b32.xlu1 %v2704_v50, %s2225_s19  ;;  %v2730_v50 = vsel %vm623_vm2, %v660_v30, %v662_v34  ;;  %v672_v30 = vrot.slane %v2487_v11, 2  ;;  %v674_v34 = vrot.slane %v2498_v23, 2 }
  0x6b   : > { %4205 = vst [vmem:[#allocation52_spill] sm:$0xff] %v2730_v50 }
  0x6c   : > { %v2764_v11 = vsel %vm623_vm2, %v674_v34, %v675_v24  ;;  %v685_v34 = vrot.slane %v2549_v10, 2 }
  0x6d   : > { %723 = vrot.lane.b32.xlu0 %v2712_v19, %s2225_s19 }
  0x6e   : > { %725 = vrot.lane.b32.xlu1 %v2717_v12, %s2225_s19  ;;  %v2743_v12 = vsel %vm623_vm2, %v665_v28, %v667_v35  ;;  %v677_v28 = vrot.slane %v2503_v29, 2  ;;  %v679_v35 = vrot.slane %v2525_v60, 2 }
  0x6f   : > { %4207 = vst [vmem:[#allocation54_spill] sm:$0xff] %v2743_v12 }
  0x70   : > { %v2777_v29 = vsel %vm623_vm2, %v679_v35, %v680_v9  ;;  %v690_v35 = vrot.slane %v2573_v0, 2 }
  0x71   : > { %727 = vrot.lane.b32.xlu0 %v2725_v46, %s2225_s19  ;;  %v2769_v46 = vsel %vm623_vm2, %v675_v24, %v677_v28  ;;  %4208 = vst [vmem:[#allocation55_spill] sm:$0xff] %v2777_v29  ;;  %v687_v24 = vrot.slane %v2555_v42, 2  ;;  %v689_v28 = vrot.slane %v2576_v7, 2 }
  0x72   : > { %729 = vrot.lane.b32.xlu1 %v2730_v50, %s2225_s19  ;;  %v2756_v50 = vsel %vm623_vm2, %v670_v18, %v672_v30  ;;  %v682_v18 = vrot.slane %v2531_v54, 2  ;;  %v684_v30 = vrot.slane %v2552_v31, 2 }
  0x73   : > { %v2795_v6 = vsel %vm623_vm2, %v685_v34, %v687_v24  ;;  %v2803_v42 = vsel %vm623_vm2, %v689_v28, %v690_v35 }
  0x74   : > { %v2782_v19 = vsel %vm623_vm2, %v680_v9, %v682_v18  ;;  %v2790_v54 = vsel %vm623_vm2, %v684_v30, %v685_v34  ;;  %4211 = vst [vmem:[#allocation58_spill] sm:$0xff] %v2795_v6  ;;  %v692_v9 = vrot.slane %v2579_v44, 2  ;;  %4212 = vst [vmem:[#allocation59_spill] sm:$0xff] %v2803_v42  ;;  %v694_v18 = vrot.slane %v2598_v57, 2 }
  0x75   : > { %731 = vrot.lane.b32.xlu0 %v2738_v4, %s2225_s19  ;;  %4209 = vst [vmem:[#allocation56_spill] sm:$0xff] %v2782_v19  ;;  %4210 = vst [vmem:[#allocation57_spill] sm:$0xff] %v2790_v54  ;;  %v695_v30 = vrot.slane %v2595_v55, 2  ;;  %v697_v34 = vrot.slane %v2601_v48, 2 }
  0x76   : > { %733 = vrot.lane.b32.xlu1 %v2743_v12, %s2225_s19  ;;  %v2808_v58 = vsel %vm623_vm2, %v690_v35, %v692_v9 }
  0x77   : > { %4213 = vst [vmem:[#allocation60_spill] sm:$0xff] %v2808_v58  ;;  %v2816_v44 = vsel %vm623_vm2, %v694_v18, %v695_v30  ;;  %v2821_v28 = vsel %vm623_vm2, %v695_v30, %v697_v34 }
  0x78   : > { %4214 = vst [vmem:[#allocation61_spill] sm:$0xff] %v2816_v44  ;;  %4215 = vst [vmem:[#allocation62_spill] sm:$0xff] %v2821_v28 }
  0x79   : > { %735 = vrot.lane.b32.xlu0 %v2751_v40, %s2225_s19 }
  0x7a   : > { %737 = vrot.lane.b32.xlu1 %v2756_v50, %s2225_s19 }
  0x7d   : > { %739 = vrot.lane.b32.xlu0 %v2764_v11, %s2225_s19 }
  0x7e   : > { %741 = vrot.lane.b32.xlu1 %v2769_v46, %s2225_s19 }
  0x81   : > { %743 = vrot.lane.b32.xlu0 %v2777_v29, %s2225_s19 }
  0x82   : > { %745 = vrot.lane.b32.xlu1 %v2782_v19, %s2225_s19 }
  0x85   : > { %747 = vrot.lane.b32.xlu0 %v2790_v54, %s2225_s19 }
  0x86   : > { %749 = vrot.lane.b32.xlu1 %v2795_v6, %s2225_s19 }
  0x89   : > { %751 = vrot.lane.b32.xlu0 %v2803_v42, %s2225_s19 }
  0x8a   : > { %753 = vrot.lane.b32.xlu1 %v2808_v58, %s2225_s19 }
  0x8b   : > { %v2818_v24 = vpop.permute.xlu0 %533 }
  0x8c   : > { %v2823_v6 = vpop.permute.xlu1 %537 }
  0x8d   : > { %4216 = vst [vmem:[#allocation63_spill] sm:$0xff] %v2823_v6  ;;  %755 = vrot.lane.b32.xlu0 %v2816_v44, %s2225_s19 }
  0x8e   : > { %757 = vrot.lane.b32.xlu1 %v2821_v28, %s2225_s19 }
  0x8f   : > { %v2829_v48 = vpop.permute.xlu0 %535 }
  0x90   : > { %v2831_v35 = vpop.permute.xlu1 %539 }
  0x91   : > { %4217 = vst [vmem:[#allocation64_spill] sm:$0xff] %v2831_v35  ;;  %790 = vrot.lane.b32.xlu0 %v2288_v21, %s2226_s20 }
  0x92   : > { %792 = vrot.lane.b32.xlu1 %v2285_v20, %s2226_s20 }
  0x93   : > { %v2837_v9 = vpop.permute.xlu0 %541 }
  0x94   : > { %v2839_v18 = vpop.permute.xlu1 %543 }
  0x95   : > { %794 = vrot.lane.b32.xlu0 %v2279_v14, %s2226_s20 }
  0x96   : > { %796 = vrot.lane.b32.xlu1 %v2276_v13, %s2226_s20 }
  0x97   : > { %v2845_v30 = vpop.permute.xlu0 %545 }
  0x98   : > { %v2847_v34 = vpop.permute.xlu1 %547 }
  0x99   : > { %798 = vrot.lane.b32.xlu0 %v2311_v33, %s2226_s20 }
  0x9a   : > { %800 = vrot.lane.b32.xlu1 %v2323_v39, %s2226_s20 }
  0x9b   : > { %v2853_v28 = vpop.permute.xlu0 %549 }
  0x9c   : > { %v2855_v44 = vpop.permute.xlu1 %551 }
  0x9d   : > { %802 = vrot.lane.b32.xlu0 %v2341_v52, %s2226_s20 }
  0x9e   : > { %804 = vrot.lane.b32.xlu1 %v2338_v51, %s2226_s20 }
  0x9f   : > { %v2861_v58 = vpop.permute.xlu0 %553 }
  0xa0   : > { %v2863_v42 = vpop.permute.xlu1 %555 }
  0xa1   : > { %806 = vrot.lane.b32.xlu0 %v2360_v62, %s2226_s20 }
  0xa2   : > { %808 = vrot.lane.b32.xlu1 %v2357_v61, %s2226_s20 }
  0xa3   : > { %v2869_v20 = vpop.permute.xlu0 %557 }
  0xa4   : > { %v2871_v35 = vpop.permute.xlu1 %559 }
  0xa5   : > { %810 = vrot.lane.b32.xlu0 %v2384_v16, %s2226_s20 }
  0xa6   : > { %812 = vrot.lane.b32.xlu1 %v2381_v15, %s2226_s20 }
  0xa7   : > { %v2877_v21 = vpop.permute.xlu0 %561 }
  0xa8   : > { %4218 = vst [vmem:[#allocation65_spill] sm:$0xff] %v2877_v21  ;;  %v2879_v6 = vpop.permute.xlu1 %563 }
  0xa9   : > { %4219 = vst [vmem:[#allocation66_spill] sm:$0xff] %v2879_v6  ;;  %814 = vrot.lane.b32.xlu0 %v2410_v41, %s2226_s20 }
  0xaa   : > { %816 = vrot.lane.b32.xlu1 %v2406_v36, %s2226_s20 }
  0xab   : > { %v2885_v54 = vpop.permute.xlu0 %565 }
  0xac   : > { %4220 = vst [vmem:[#allocation67_spill] sm:$0xff] %v2885_v54  ;;  %v2887_v19 = vpop.permute.xlu1 %567 }
  0xad   : > { %4221 = vst [vmem:[#allocation68_spill] sm:$0xff] %v2887_v19  ;;  %818 = vrot.lane.b32.xlu0 %v2434_v3, %s2226_s20 }
  0xae   : > { %820 = vrot.lane.b32.xlu1 %v2431_v2, %s2226_s20 }
  0xaf   : > { %v2893_v29 = vpop.permute.xlu0 %569 }
  0xb0   : > { %v2895_v21 = vpop.permute.xlu1 %571 }
  0xb1   : > { %822 = vrot.lane.b32.xlu0 %v2440_v5, %s2226_s20 }
  0xb2   : > { %824 = vrot.lane.b32.xlu1 %v2445_v8, %s2226_s20 }
  0xb3   : > { %v2901_v6 = vpop.permute.xlu0 %573 }
  0xb4   : > { %v2903_v54 = vpop.permute.xlu1 %575 }
  0xb5   : > { %826 = vrot.lane.b32.xlu0 %v2471_v47, %s2226_s20 }
  0xb6   : > { %828 = vrot.lane.b32.xlu1 %v2468_v45, %s2226_s20 }
  0xb7   : > { %v2909_v19 = vpop.permute.xlu0 %577 }
  0xb8   : > { %v2911_v2 = vpop.permute.xlu1 %579 }
  0xb9   : > { %4222 = vst [vmem:[#allocation69_spill] sm:$0xff] %v2911_v2  ;;  %830 = vrot.lane.b32.xlu0 %v2498_v23, %s2226_s20  ;;  %v2939_v2 = vld [vmem:[%s2268_s17 + $0xf8] sm:$0xff] }
  0xba   : > { %832 = vrot.lane.b32.xlu1 %v2495_v22, %s2226_s20  ;;  %4229 = vst [vmem:[#allocation76_spill] sm:$0xff] %v2939_v2 }
  0xbb   : > { %v2917_v8 = vpop.permute.xlu0 %581 }
  0xbc   : > { %4223 = vst [vmem:[#allocation70_spill] sm:$0xff] %v2917_v8  ;;  %v2919_v5 = vpop.permute.xlu1 %583  ;;  %v201_v8 = vld [vmem:[%s2268_s17 + $0xf0] sm:$0xff] }
  0xbd   : > { %4224 = vst [vmem:[#allocation71_spill] sm:$0xff] %v2919_v5  ;;  %834 = vrot.lane.b32.xlu0 %v2525_v60, %s2226_s20  ;;  %v4240_v60 = vld [vmem:[#allocation26_spill] sm:$0xff] }
  0xbe   : > { %836 = vrot.lane.b32.xlu1 %v2522_v59, %s2226_s20 }
  0xbf   : > { %v2925_v3 = vpop.permute.xlu0 %585 }
  0xc0   : > { %4225 = vst [vmem:[#allocation72_spill] sm:$0xff] %v2925_v3  ;;  %v2927_v43 = vpop.permute.xlu1 %587  ;;  %v313_v3 = vrot.slane %v201_v8, 7 }
  0xc1   : > { %4226 = vst [vmem:[#allocation73_spill] sm:$0xff] %v2927_v43  ;;  %838 = vrot.lane.b32.xlu0 %v2552_v31, %s2226_s20  ;;  %v234_v43 = vrot.slane %v201_v8, 1  ;;  %v4140_v31 = vrot.slane %v2939_v2, 7 }
  0xc2   : > { %840 = vrot.lane.b32.xlu1 %v2549_v10, %s2226_s20 }
  0xc3   : > { %v2933_v49 = vpop.permute.xlu0 %589  ;;  %v2962_v8 = vsel %vm267_vm0, %v313_v3, %v4140_v31 }
  0xc4   : > { %4227 = vst [vmem:[#allocation74_spill] sm:$0xff] %v2933_v49  ;;  %v2936_v5 = vpop.permute.xlu1 %591  ;;  %4232 = vst [vmem:[#allocation79_spill] sm:$0xff] %v2962_v8 }
  0xc5   : > { %4228 = vst [vmem:[#allocation75_spill] sm:$0xff] %v2936_v5  ;;  %842 = vrot.lane.b32.xlu0 %v2576_v7, %s2226_s20  ;;  %v2955_v5 = vsel %vm267_vm0, %v234_v43, %v313_v3 }
  0xc6   : > { %844 = vrot.lane.b32.xlu1 %v2573_v0, %s2226_s20  ;;  %4230 = vst [vmem:[#allocation77_spill] sm:$0xff] %v2955_v5 }
  0xc7   : > { %v2945_v59 = vpop.permute.xlu0 %699 }
  0xc8   : > { %v2948_v10 = vpop.permute.xlu1 %701 }
  0xc9   : > { %846 = vrot.lane.b32.xlu0 %v2598_v57, %s2226_s20 }
  0xca   : > { %848 = vrot.lane.b32.xlu1 %v2595_v55, %s2226_s20 }
  0xcb   : > { %v2957_v49 = vpop.permute.xlu0 %703 }
  0xcc   : > { %4231 = vst [vmem:[#allocation78_spill] sm:$0xff] %v2957_v49  ;;  %v2964_v0 = vpop.permute.xlu1 %705 }
  0xcd   : > { %4233 = vst [vmem:[#allocation80_spill] sm:$0xff] %v2964_v0  ;;  %850 = vrot.lane.b32.xlu0 %v2955_v5, %s2226_s20  ;;  %v1620_v5 = vld [vmem:[%s4029_s1 + $0x8] sm:$0xff] }
  0xce   : > { %852 = vrot.lane.b32.xlu1 %v2962_v8, %s2226_s20  ;;  %v1619_v8 = vld [vmem:[%s4029_s1] sm:$0xff]  ;;  %v4238_v0 = vld [vmem:[#allocation23_spill] sm:$0xff] }
  0xcf   : > { %v2970_v57 = vpop.permute.xlu0 %707  ;;  %v2186_v49 = vpack.c.bf16 %v1620_v5, %v1619_v8 }
  0xd0   : > { %v2972_v55 = vpop.permute.xlu1 %709 }
  0xd1   : > { %892 = vrot.lane.b32.xlu0 %v2308_v32, %s2227_s21  ;;  %2187 = vmatprep.subr.bf16.mxu0 %v2186_v49 }
  0xd2   : > { %924 = vrot.lane.b32.xlu1 %v2492_v17, %s2227_s21  ;;  %2194 = vmatprep.subr.bf16.mxu1 %v2186_v49 }
  0xd3   : > { %v2978_v3 = vpop.permute.xlu0 %711  ;;  %2189 = vmatpush3.bf16.msra.mxu0 %v2186_v49  ;;  %2197 = vmatpush3.bf16.msra.mxu1 %v2186_v49 }
  0xd4   : > { %v2980_v43 = vpop.permute.xlu1 %713 }
  0xd5   : > { %894 = vrot.lane.b32.xlu0 %v2320_v38, %s2227_s21 }
  0xd6   : > { %926 = vrot.lane.b32.xlu1 %v2507_v56, %s2227_s21 }
  0xd7   : > { %v2986_v31 = vpop.permute.xlu0 %715 }
  0xd8   : > { %v2988_v2 = vpop.permute.xlu1 %717 }
  0xd9   : > { %993 = vrot.lane.b32.xlu0 %v2647_v25, %s2228_s22 }
  0xda   : > { %1025 = vrot.lane.b32.xlu1 %v2738_v4, %s2228_s22 }
  0xdb   : > { %v2994_v32 = vpop.permute.xlu0 %719 }
  0xdc   : > { %v2996_v17 = vpop.permute.xlu1 %721 }
  0xdd   : > { %995 = vrot.lane.b32.xlu0 %v2652_v63, %s2228_s22 }
  0xde   : > { %1027 = vrot.lane.b32.xlu1 %v2743_v12, %s2228_s22 }
  0xdf   : > { %v3002_v38 = vpop.permute.xlu0 %723 }
  0xe0   : > { %v3004_v56 = vpop.permute.xlu1 %725 }
  0xe1   : > { %1089 = vrot.lane.b32.xlu0 %v2279_v14, %s2229_s23 }
  0xe2   : > { %1121 = vrot.lane.b32.xlu1 %v2471_v47, %s2229_s23 }
  0xe3   : > { %v3010_v25 = vpop.permute.xlu0 %727 }
  0xe4   : > { %4234 = vst [vmem:[#allocation81_spill] sm:$0xff] %v3010_v25  ;;  %v3012_v4 = vpop.permute.xlu1 %729  ;;  %v1622_v25 = vld [vmem:[%s4029_s1 + $0x18] sm:$0xff] }
  0xe5   : > { %4235 = vst [vmem:[#allocation82_spill] sm:$0xff] %v3012_v4  ;;  %1091 = vrot.lane.b32.xlu0 %v2276_v13, %s2229_s23 }
  0xe6   : > { %1123 = vrot.lane.b32.xlu1 %v2468_v45, %s2229_s23 }
  0xe7   : > { %v3018_v63 = vpop.permute.xlu0 %731 }
  0xe8   : > { %4236 = vst [vmem:[#allocation83_spill] sm:$0xff] %v3018_v63  ;;  %v3020_v12 = vpop.permute.xlu1 %733 }
  0xe9   : > { %4237 = vst [vmem:[#allocation84_spill] sm:$0xff] %v3020_v12  ;;  %1179 = vrot.lane.b32.xlu0 %v2300_v27, %s2230_s24  ;;  %v1621_v12 = vld [vmem:[%s4029_s1 + $0x10] sm:$0xff] }
  0xea   : > { %1211 = vrot.lane.b32.xlu1 %v4238_v0, %s2230_s24  ;;  %v2190_v5 = vpack.c.bf16 %v1622_v25, %v1621_v12 }
  0xeb   : > { %v3032_v4 = vpop.permute.xlu0 %735 }
  0xec   : > { %v3034_v63 = vpop.permute.xlu1 %737  ;;  %2191 = vmatprep.subr.bf16.mxu0 %v2190_v5  ;;  %2195 = vmatprep.subr.bf16.mxu1 %v2190_v5 }
  0xed   : > { %896 = vrot.lane.b32.xlu0 %v2300_v27, %s2227_s21  ;;  %v4239_v27 = vld [vmem:[#allocation4_spill] sm:$0xff]  ;;  %2193 = vmatpush3.bf16.msra.mxu0 %v2190_v5 }
  0xee   : > { %928 = vrot.lane.b32.xlu1 %v4238_v0, %s2227_s21  ;;  %2198 = vmatpush3.bf16.msra.mxu1 %v2190_v5  ;;  %v1623_v0 = vld [vmem:[%s4029_s1 + $0x20] sm:$0xf] }
  0xef   : > { %v3046_v8 = vpop.permute.xlu0 %739  ;;  %2136 = vmatprep.subr.msk.mxu0 %vm1728_vm3, %v1623_v0  ;;  %2196 = vmatprep.subr.msk.mxu1 %vm1728_vm3, %v1623_v0 }
  0xf0   : > { %v3048_v7 = vpop.permute.xlu1 %741 }
  0xf1   : > { %1181 = vrot.lane.b32.xlu0 %v4239_v27, %s2230_s24  ;;  %2137 = vmatpush3.msk.msra.mxu0 %vm1728_vm3, %v1623_v0 }
  0xf2   : > { %1213 = vrot.lane.b32.xlu1 %v4240_v60, %s2230_s24  ;;  %2199 = vmatpush3.msk.msra.mxu1 %vm1728_vm3, %v1623_v0 }
  0xf3   : > { %v3057_v49 = vpop.permute.xlu0 %743 }
  0xf4   : > { %4241 = vst [vmem:[#allocation23_spill] sm:$0xff] %v3057_v49  ;;  %v3059_v12 = vpop.permute.xlu1 %745 }
  0xf5   : > { %4242 = vst [vmem:[#allocation4_spill] sm:$0xff] %v3059_v12  ;;  %1269 = vrot.lane.b32.xlu0 %v2634_v37, %s2231_s8 }
  0xf6   : > { %1301 = vrot.lane.b32.xlu1 %v2751_v40, %s2231_s8 }
  0xf7   : > { %v3065_v25 = vpop.permute.xlu0 %747 }
  0xf8   : > { %4243 = vst [vmem:[#allocation26_spill] sm:$0xff] %v3065_v25  ;;  %v3067_v5 = vpop.permute.xlu1 %749 }
  0xf9   : > { %898 = vrot.lane.b32.xlu0 %v4239_v27, %s2227_s21 }
  0xfa   : > { %930 = vrot.lane.b32.xlu1 %v4240_v60, %s2227_s21 }
  0xfb   : > { %v3073_v12 = vpop.permute.xlu0 %751 }
  0xfc   : > { %v3075_v49 = vpop.permute.xlu1 %753 }
  0xfd   : > { %997 = vrot.lane.b32.xlu0 %v2634_v37, %s2228_s22 }
  0xfe   : > { %1029 = vrot.lane.b32.xlu1 %v2751_v40, %s2228_s22 }
  0xff   : > { %v3081_v0 = vpop.permute.xlu0 %755 }
 0x100   : > { %v3083_v25 = vpop.permute.xlu1 %757 }
 0x101   : > { %1271 = vrot.lane.b32.xlu0 %v2639_v53, %s2231_s8 }
 0x102   : > { %1303 = vrot.lane.b32.xlu1 %v2756_v50, %s2231_s8 }
 0x103   : > { %v3089_v60 = vpop.permute.xlu0 %790 }
 0x104   : > { %4244 = vst [vmem:[#allocation85_spill] sm:$0xff] %v3089_v60  ;;  %v3091_v27 = vpop.permute.xlu1 %792  ;;  %v1360_v60 = vsel %vm1359_vm4, %v2279_v14, %v2818_v24 }
 0x105   : > { %4245 = vst [vmem:[#allocation86_spill] sm:$0xff] %v3091_v27  ;;  %999 = vrot.lane.b32.xlu0 %v2639_v53, %s2228_s22  ;;  %v3113_v53 = vsel %vm1390_vm5, %v1360_v60, %v2945_v59  ;;  %v1365_v59 = vsel %vm1359_vm4, %v2323_v39, %v2839_v18 }
 0x106   : > { %1031 = vrot.lane.b32.xlu1 %v2756_v50, %s2228_s22  ;;  %v1361_v50 = vsel %vm1359_vm4, %v2276_v13, %v2829_v48  ;;  %v1364_v13 = vsel %vm1359_vm4, %v2311_v33, %v2837_v9  ;;  %v1396_v60 = vsel %vm1390_vm5, %v1365_v59, %v2972_v55  ;;  %v4248_v9 = vld [vmem:[#allocation5_spill] sm:$0xff]  ;;  %v1367_v55 = vsel %vm1359_vm4, %v2338_v51, %v2847_v34 }
 0x107   : > { %v3097_v37 = vpop.permute.xlu0 %794  ;;  %v1368_v34 = vsel %vm1359_vm4, %v2360_v62, %v2853_v28 }
 0x108   : > { %4246 = vst [vmem:[#allocation87_spill] sm:$0xff] %v3097_v37  ;;  %v3099_v40 = vpop.permute.xlu1 %796  ;;  %v3117_v37 = vsel %vm1390_vm5, %v1361_v50, %v2948_v10  ;;  %v1395_v10 = vsel %vm1390_vm5, %v1364_v13, %v2970_v57  ;;  %v4249_v57 = vld [vmem:[#allocation27_spill] sm:$0xff]  ;;  %v1398_v13 = vsel %vm1390_vm5, %v1367_v55, %v2980_v43  ;;  %v1399_v43 = vsel %vm1390_vm5, %v1368_v34, %v2986_v31  ;;  %v4251_v31 = vld [vmem:[#allocation28_spill] sm:$0xff] }
 0x109   : > { %4247 = vst [vmem:[#allocation88_spill] sm:$0xff] %v3099_v40  ;;  %1093 = vrot.lane.b32.xlu0 %v2311_v33, %s2229_s23 }
 0x10a   : > { %1125 = vrot.lane.b32.xlu1 %v2498_v23, %s2229_s23 }
 0x10b   : > { %v799_v40 = vpop.permute.xlu0 %798 }
 0x10c   : > { %v3121_v14 = vsel %vm1421_vm6, %v3113_v53, %v799_v40  ;;  %v801_v24 = vpop.permute.xlu1 %800 }
 0x10d   : > { %v3125_v27 = vsel %vm1421_vm6, %v3117_v37, %v801_v24  ;;  %1095 = vrot.lane.b32.xlu0 %v2323_v39, %s2229_s23  ;;  %v1366_v39 = vsel %vm1359_vm4, %v2341_v52, %v2845_v30 }
 0x10e   : > { %1127 = vrot.lane.b32.xlu1 %v2495_v22, %s2229_s23  ;;  %v1397_v18 = vsel %vm1390_vm5, %v1366_v39, %v2978_v3  ;;  %v1369_v3 = vsel %vm1359_vm4, %v2357_v61, %v2855_v44  ;;  %v4250_v39 = vld [vmem:[#allocation6_spill] sm:$0xff]  ;;  %v1370_v44 = vsel %vm1359_vm4, %v2384_v16, %v2861_v58 }
 0x10f   : > { %v803_v48 = vpop.permute.xlu0 %802 }
 0x110   : > { %v3142_v40 = vsel %vm1421_vm6, %v1395_v10, %v803_v48  ;;  %v805_v50 = vpop.permute.xlu1 %804 }
 0x111   : > { %v3145_v33 = vsel %vm1421_vm6, %v1396_v60, %v805_v50  ;;  %1183 = vrot.lane.b32.xlu0 %v4248_v9, %s2230_s24  ;;  %v1400_v60 = vsel %vm1390_vm5, %v1369_v3, %v2988_v2  ;;  %v1371_v2 = vsel %vm1359_vm4, %v2381_v15, %v2863_v42  ;;  %v1372_v42 = vsel %vm1359_vm4, %v2410_v41, %v2869_v20 }
 0x112   : > { %1215 = vrot.lane.b32.xlu1 %v4249_v57, %s2230_s24 }
 0x113   : > { %v807_v24 = vpop.permute.xlu0 %806 }
 0x114   : > { %v3162_v59 = vsel %vm1421_vm6, %v1397_v18, %v807_v24  ;;  %v809_v10 = vpop.permute.xlu1 %808  ;;  %v1402_v18 = vsel %vm1390_vm5, %v1371_v2, %v2996_v17  ;;  %v1373_v17 = vsel %vm1359_vm4, %v2406_v36, %v2871_v35 }
 0x115   : > { %v3165_v30 = vsel %vm1421_vm6, %v1398_v13, %v809_v10  ;;  %900 = vrot.lane.b32.xlu0 %v4248_v9, %s2227_s21  ;;  %v1404_v34 = vsel %vm1390_vm5, %v1373_v17, %v3004_v56  ;;  %v4259_v17 = vld [vmem:[#allocation70_spill] sm:$0xff] }
 0x116   : > { %932 = vrot.lane.b32.xlu1 %v4249_v57, %s2227_s21  ;;  %v1401_v57 = vsel %vm1390_vm5, %v1370_v44, %v2994_v32  ;;  %v1403_v32 = vsel %vm1390_vm5, %v1372_v42, %v3002_v38 }
 0x117   : > { %v811_v48 = vpop.permute.xlu0 %810 }
 0x118   : > { %v3182_v50 = vsel %vm1421_vm6, %v1399_v43, %v811_v48  ;;  %v813_v9 = vpop.permute.xlu1 %812 }
 0x119   : > { %v3185_v28 = vsel %vm1421_vm6, %v1400_v60, %v813_v9  ;;  %1185 = vrot.lane.b32.xlu0 %v4250_v39, %s2230_s24  ;;  %v1378_v60 = vsel %vm1359_vm4, %v2471_v47, %v2893_v29 }
 0x11a   : > { %1217 = vrot.lane.b32.xlu1 %v4251_v31, %s2230_s24 }
 0x11b   : > { %v815_v55 = vpop.permute.xlu0 %814 }
 0x11c   : > { %v3202_v24 = vsel %vm1421_vm6, %v1401_v57, %v815_v55  ;;  %v817_v13 = vpop.permute.xlu1 %816 }
 0x11d   : > { %v3205_v58 = vsel %vm1421_vm6, %v1402_v18, %v817_v13  ;;  %1273 = vrot.lane.b32.xlu0 %v2660_v26, %s2231_s8  ;;  %v4258_v18 = vld [vmem:[#allocation4_spill] sm:$0xff] }
 0x11e   : > { %1305 = vrot.lane.b32.xlu1 %v2764_v11, %s2231_s8 }
 0x11f   : > { %v819_v10 = vpop.permute.xlu0 %818 }
 0x120   : > { %v3222_v3 = vsel %vm1421_vm6, %v1403_v32, %v819_v10  ;;  %v821_v43 = vpop.permute.xlu1 %820  ;;  %v4260_v32 = vld [vmem:[#allocation30_spill] sm:$0xff] }
 0x121   : > { %4252 = vst [vmem:[#allocation5_spill] sm:$0xff] %v3222_v3  ;;  %v3225_v20 = vsel %vm1421_vm6, %v1404_v34, %v821_v43  ;;  %902 = vrot.lane.b32.xlu0 %v4250_v39, %s2227_s21  ;;  %v1384_v10 = vsel %vm1359_vm4, %v4260_v32, %v4259_v17  ;;  %v4261_v34 = vld [vmem:[#allocation71_spill] sm:$0xff]  ;;  %v4262_v43 = vld [vmem:[#allocation29_spill] sm:$0xff] }
 0x122   : > { %4253 = vst [vmem:[#allocation27_spill] sm:$0xff] %v3225_v20  ;;  %934 = vrot.lane.b32.xlu1 %v4251_v31, %s2227_s21  ;;  %v4274_v17 = vld [vmem:[#allocation37_spill] sm:$0xff] }
 0x123   : > { %v3231_v35 = vpop.permute.xlu0 %822 }
 0x124   : > { %v3233_v38 = vpop.permute.xlu1 %824 }
 0x125   : > { %1001 = vrot.lane.b32.xlu0 %v2660_v26, %s2228_s22  ;;  %v1379_v26 = vsel %vm1359_vm4, %v2468_v45, %v2895_v21  ;;  %v1380_v21 = vsel %vm1359_vm4, %v2498_v23, %v2901_v6  ;;  %v1381_v45 = vsel %vm1359_vm4, %v2495_v22, %v2903_v54  ;;  %v4254_v6 = vld [vmem:[#allocation25_spill] sm:$0xff]  ;;  %v4256_v54 = vld [vmem:[#allocation24_spill] sm:$0xff] }
 0x126   : > { %1033 = vrot.lane.b32.xlu1 %v2764_v11, %s2228_s22  ;;  %v1409_v11 = vsel %vm1390_vm5, %v1378_v60, %v3032_v4  ;;  %v1410_v39 = vsel %vm1390_vm5, %v1379_v26, %v3034_v63  ;;  %v1411_v4 = vsel %vm1390_vm5, %v1380_v21, %v3046_v8  ;;  %v1412_v63 = vsel %vm1390_vm5, %v1381_v45, %v3048_v7  ;;  %v4257_v8 = vld [vmem:[#allocation23_spill] sm:$0xff]  ;;  %v4263_v26 = vld [vmem:[#allocation26_spill] sm:$0xff] }
 0x127   : > { %v3239_v56 = vpop.permute.xlu0 %826  ;;  %v1382_v22 = vsel %vm1359_vm4, %v4254_v6, %v2909_v19  ;;  %v1385_v60 = vsel %vm1359_vm4, %v4262_v43, %v4261_v34  ;;  %v4264_v45 = vld [vmem:[#allocation7_spill] sm:$0xff] }
 0x128   : > { %v3241_v48 = vpop.permute.xlu1 %828  ;;  %v1413_v57 = vsel %vm1390_vm5, %v1382_v22, %v4257_v8  ;;  %v4269_v22 = vld [vmem:[#allocation33_spill] sm:$0xff] }
 0x129   : > { %1275 = vrot.lane.b32.xlu0 %v2665_v1, %s2231_s8 }
 0x12a   : > { %1307 = vrot.lane.b32.xlu1 %v2769_v46, %s2231_s8 }
 0x12b   : > { %v831_v9 = vpop.permute.xlu0 %830 }
 0x12c   : > { %v3258_v44 = vsel %vm1421_vm6, %v1409_v11, %v831_v9  ;;  %v833_v31 = vpop.permute.xlu1 %832  ;;  %v1415_v11 = vsel %vm1390_vm5, %v1384_v10, %v4263_v26 }
 0x12d   : > { %v3261_v47 = vsel %vm1421_vm6, %v1410_v39, %v833_v31  ;;  %1003 = vrot.lane.b32.xlu0 %v2665_v1, %s2228_s22  ;;  %v1416_v39 = vsel %vm1390_vm5, %v1385_v60, %v3067_v5 }
 0x12e   : > { %1035 = vrot.lane.b32.xlu1 %v2769_v46, %s2228_s22  ;;  %v4255_v46 = vld [vmem:[#allocation69_spill] sm:$0xff] }
 0x12f   : > { %v835_v29 = vpop.permute.xlu0 %834  ;;  %v1383_v7 = vsel %vm1359_vm4, %v4256_v54, %v4255_v46 }
 0x130   : > { %v3278_v1 = vsel %vm1421_vm6, %v1411_v4, %v835_v29  ;;  %v837_v2 = vpop.permute.xlu1 %836  ;;  %v1414_v13 = vsel %vm1390_vm5, %v1383_v7, %v4258_v18  ;;  %v4265_v4 = vld [vmem:[#allocation72_spill] sm:$0xff]  ;;  %v4266_v29 = vld [vmem:[#allocation34_spill] sm:$0xff] }
 0x131   : > { %v3281_v23 = vsel %vm1421_vm6, %v1412_v63, %v837_v2  ;;  %1097 = vrot.lane.b32.xlu0 %v2341_v52, %s2229_s23  ;;  %v1386_v63 = vsel %vm1359_vm4, %v4266_v29, %v4265_v4  ;;  %v4267_v2 = vld [vmem:[#allocation31_spill] sm:$0xff]  ;;  %v4271_v18 = vld [vmem:[#allocation74_spill] sm:$0xff] }
 0x132   : > { %1129 = vrot.lane.b32.xlu1 %v4254_v6, %s2229_s23  ;;  %v4268_v6 = vld [vmem:[#allocation73_spill] sm:$0xff]  ;;  %v1417_v46 = vsel %vm1390_vm5, %v1386_v63, %v3073_v12  ;;  %v4273_v12 = vld [vmem:[#allocation75_spill] sm:$0xff] }
 0x133   : > { %v839_v55 = vpop.permute.xlu0 %838  ;;  %v1387_v5 = vsel %vm1359_vm4, %v4269_v22, %v4268_v6 }
 0x134   : > { %v3298_v52 = vsel %vm1421_vm6, %v1413_v57, %v839_v55  ;;  %v841_v42 = vpop.permute.xlu1 %840  ;;  %v1418_v7 = vsel %vm1390_vm5, %v1387_v5, %v3075_v49  ;;  %v1389_v49 = vsel %vm1359_vm4, %v4274_v17, %v4273_v12 }
 0x135   : > { %v3301_v19 = vsel %vm1421_vm6, %v1414_v13, %v841_v42  ;;  %1099 = vrot.lane.b32.xlu0 %v2338_v51, %s2229_s23  ;;  %v4272_v13 = vld [vmem:[#allocation38_spill] sm:$0xff]  ;;  %v1420_v60 = vsel %vm1390_vm5, %v1389_v49, %v3083_v25  ;;  %v4279_v25 = vld [vmem:[#allocation55_spill] sm:$0xff] }
 0x136   : > { %1131 = vrot.lane.b32.xlu1 %v4256_v54, %s2229_s23  ;;  %v1388_v42 = vsel %vm1359_vm4, %v4272_v13, %v4271_v18 }
 0x137   : > { %v843_v9 = vpop.permute.xlu0 %842  ;;  %v1419_v10 = vsel %vm1390_vm5, %v1388_v42, %v3081_v0  ;;  %v4278_v0 = vld [vmem:[#allocation43_spill] sm:$0xff] }
 0x138   : > { %v3318_v51 = vsel %vm1421_vm6, %v1415_v11, %v843_v9  ;;  %v845_v31 = vpop.permute.xlu1 %844 }
 0x139   : > { %v3321_v21 = vsel %vm1421_vm6, %v1416_v39, %v845_v31  ;;  %1187 = vrot.lane.b32.xlu0 %v4264_v45, %s2230_s24  ;;  %v4276_v39 = vld [vmem:[#allocation8_spill] sm:$0xff] }
 0x13a   : > { %1219 = vrot.lane.b32.xlu1 %v4267_v2, %s2230_s24  ;;  %v4277_v31 = vld [vmem:[#allocation32_spill] sm:$0xff] }
 0x13b   : > { %v847_v54 = vpop.permute.xlu0 %846 }
 0x13c   : > { %v3338_v8 = vsel %vm1421_vm6, %v1417_v46, %v847_v54  ;;  %v849_v57 = vpop.permute.xlu1 %848 }
 0x13d   : > { %v3341_v55 = vsel %vm1421_vm6, %v1418_v7, %v849_v57  ;;  %904 = vrot.lane.b32.xlu0 %v4264_v45, %s2227_s21  ;;  %v4280_v7 = vld [vmem:[#allocation44_spill] sm:$0xff] }
 0x13e   : > { %4270 = vst [vmem:[#allocation6_spill] sm:$0xff] %v3341_v55  ;;  %936 = vrot.lane.b32.xlu1 %v4267_v2, %s2227_s21  ;;  %v4281_v57 = vld [vmem:[#allocation56_spill] sm:$0xff] }
 0x13f   : > { %v851_v34 = vpop.permute.xlu0 %850 }
 0x140   : > { %v3358_v26 = vsel %vm1421_vm6, %v1419_v10, %v851_v34  ;;  %v853_v11 = vpop.permute.xlu1 %852 }
 0x141   : > { %v3361_v9 = vsel %vm1421_vm6, %v1420_v60, %v853_v11  ;;  %1189 = vrot.lane.b32.xlu0 %v4276_v39, %s2230_s24 }
 0x142   : > { %4275 = vst [vmem:[#allocation28_spill] sm:$0xff] %v3361_v9  ;;  %1221 = vrot.lane.b32.xlu1 %v4277_v31, %s2230_s24 }
 0x143   : > { %v893_v45 = vpop.permute.xlu0 %892 }
 0x144   : > { %v925_v4 = vpop.permute.xlu1 %924 }
 0x145   : > { %1277 = vrot.lane.b32.xlu0 %v4278_v0, %s2231_s8 }
 0x146   : > { %1309 = vrot.lane.b32.xlu1 %v4279_v25, %s2231_s8 }
 0x147   : > { %v3371_v63 = vpop.permute.xlu0 %894 }
 0x148   : > { %v3373_v2 = vpop.permute.xlu1 %926 }
 0x149   : > { %906 = vrot.lane.b32.xlu0 %v4276_v39, %s2227_s21  ;;  %v4282_v39 = vld [vmem:[#allocation9_spill] sm:$0xff] }
 0x14a   : > { %938 = vrot.lane.b32.xlu1 %v4277_v31, %s2227_s21  ;;  %v4284_v31 = vld [vmem:[#allocation14_spill] sm:$0xff] }
 0x14b   : > { %v994_v6 = vpop.permute.xlu0 %993 }
 0x14c   : > { %v1026_v5 = vpop.permute.xlu1 %1025 }
 0x14d   : > { %1005 = vrot.lane.b32.xlu0 %v4278_v0, %s2228_s22  ;;  %v4285_v0 = vld [vmem:[#allocation35_spill] sm:$0xff] }
 0x14e   : > { %1037 = vrot.lane.b32.xlu1 %v4279_v25, %s2228_s22 }
 0x14f   : > { %v3383_v46 = vpop.permute.xlu0 %995 }
 0x150   : > { %v3385_v54 = vpop.permute.xlu1 %1027 }
 0x151   : > { %1279 = vrot.lane.b32.xlu0 %v4280_v7, %s2231_s8 }
 0x152   : > { %1311 = vrot.lane.b32.xlu1 %v4281_v57, %s2231_s8 }
 0x153   : > { %v1090_v18 = vpop.permute.xlu0 %1089 }
 0x154   : > { %v1122_v42 = vpop.permute.xlu1 %1121 }
 0x155   : > { %1007 = vrot.lane.b32.xlu0 %v4280_v7, %s2228_s22 }
 0x156   : > { %1039 = vrot.lane.b32.xlu1 %v4281_v57, %s2228_s22 }
 0x157   : > { %v1092_v12 = vpop.permute.xlu0 %1091 }
 0x158   : > { %v1124_v49 = vpop.permute.xlu1 %1123 }
 0x159   : > { %1101 = vrot.lane.b32.xlu0 %v2360_v62, %s2229_s23  ;;  %v4283_v62 = vld [vmem:[#allocation65_spill] sm:$0xff] }
 0x15a   : > { %1133 = vrot.lane.b32.xlu1 %v4260_v32, %s2229_s23  ;;  %v1374_v32 = vsel %vm1359_vm4, %v4284_v31, %v4283_v62 }
 0x15b   : > { %v1180_v10 = vpop.permute.xlu0 %1179 }
 0x15c   : > { %v1212_v34 = vpop.permute.xlu1 %1211 }
 0x15d   : > { %1103 = vrot.lane.b32.xlu0 %v2357_v61, %s2229_s23  ;;  %v4286_v61 = vld [vmem:[#allocation81_spill] sm:$0xff] }
 0x15e   : > { %1135 = vrot.lane.b32.xlu1 %v4262_v43, %s2229_s23  ;;  %v1405_v25 = vsel %vm1390_vm5, %v1374_v32, %v4286_v61  ;;  %v4287_v43 = vld [vmem:[#allocation85_spill] sm:$0xff] }
 0x15f   : > { %v3403_v60 = vpop.permute.xlu0 %896  ;;  %v1422_v7 = vsel %vm1421_vm6, %v3113_v53, %v4287_v43  ;;  %v1438_v20 = vsel %vm1421_vm6, %v1405_v25, %v3231_v35  ;;  %v4294_v25 = vld [vmem:[#allocation82_spill] sm:$0xff] }
 0x160   : > { %v3405_v11 = vpop.permute.xlu1 %928  ;;  %v1455_v3 = vsel %vm1454_vm7, %v1422_v7, %v893_v45  ;;  %v1471_v9 = vsel %vm1454_vm7, %v1438_v20, %v925_v4  ;;  %v4295_v7 = vld [vmem:[#allocation86_spill] sm:$0xff] }
 0x161   : > { %1191 = vrot.lane.b32.xlu0 %v4282_v39, %s2230_s24  ;;  %v1488_v55 = vsel %vm1487_vm8, %v1455_v3, %v994_v6  ;;  %v1504_v32 = vsel %vm1487_vm8, %v1471_v9, %v1026_v5  ;;  %v4288_v6 = vld [vmem:[#allocation10_spill] sm:$0xff]  ;;  %v4289_v9 = vld [vmem:[#allocation36_spill] sm:$0xff] }
 0x162   : > { %1223 = vrot.lane.b32.xlu1 %v4285_v0, %s2230_s24  ;;  %v1521_v53 = vsel %vm1520_vm9, %v1488_v55, %v1090_v18  ;;  %v1537_v35 = vsel %vm1520_vm9, %v1504_v32, %v1122_v42  ;;  %v4290_v42 = vld [vmem:[#allocation45_spill] sm:$0xff]  ;;  %v1423_v32 = vsel %vm1421_vm6, %v3117_v37, %v4295_v7 }
 0x163   : > { %v1182_v57 = vpop.permute.xlu0 %1181  ;;  %v1554_v45 = vsel %vm1553_vm10, %v1521_v53, %v1180_v10  ;;  %v1570_v20 = vsel %vm1553_vm10, %v1537_v35, %v1212_v34  ;;  %v4291_v10 = vld [vmem:[#allocation66_spill] sm:$0xff]  ;;  %v4292_v34 = vld [vmem:[#allocation13_spill] sm:$0xff] }
 0x164   : > { %v1214_v62 = vpop.permute.xlu1 %1213 }
 0x165   : > { %908 = vrot.lane.b32.xlu0 %v4282_v39, %s2227_s21  ;;  %v1375_v39 = vsel %vm1359_vm4, %v4292_v34, %v4291_v10 }
 0x166   : > { %940 = vrot.lane.b32.xlu1 %v4285_v0, %s2227_s21  ;;  %v4293_v0 = vld [vmem:[#allocation57_spill] sm:$0xff]  ;;  %v1406_v43 = vsel %vm1390_vm5, %v1375_v39, %v4294_v25 }
 0x167   : > { %v1270_v61 = vpop.permute.xlu0 %1269  ;;  %v1439_v35 = vsel %vm1421_vm6, %v1406_v43, %v3233_v38 }
 0x168   : > { %v1302_v3 = vpop.permute.xlu1 %1301  ;;  %v1587_v4 = vsel %vm1586_vm11, %v1554_v45, %v1270_v61  ;;  %v1456_v45 = vsel %vm1454_vm7, %v1423_v32, %v3371_v63  ;;  %v4298_v32 = vld [vmem:[#allocation63_spill] sm:$0xff] }
 0x169   : > { %1193 = vrot.lane.b32.xlu0 %v4288_v6, %s2230_s24  ;;  %2138 = vmatprep.mubr.msk.f32.mxu0 %vm1631_vm12, %v1587_v4  ;;  %v1603_v55 = vsel %vm1586_vm11, %v1570_v20, %v1302_v3  ;;  %v1472_v20 = vsel %vm1454_vm7, %v1439_v35, %v3373_v2  ;;  %v1489_v3 = vsel %vm1487_vm8, %v1456_v45, %v3383_v46  ;;  %v4299_v35 = vld [vmem:[#allocation3_spill] sm:$0xff] }
 0x16a   : > { %1225 = vrot.lane.b32.xlu1 %v4289_v9, %s2230_s24  ;;  %2162 = vmatprep.mubr.msk.f32.mxu1 %vm1631_vm12, %v1603_v55  ;;  %v1505_v37 = vsel %vm1487_vm8, %v1472_v20, %v3385_v54  ;;  %v1522_v4 = vsel %vm1520_vm9, %v1489_v3, %v1092_v12  ;;  %v1362_v45 = vsel %vm1359_vm4, %v4299_v35, %v4298_v32  ;;  %v4302_v20 = vld [vmem:[#allocation15_spill] sm:$0xff] }
 0x16b   : > { %v3441_v5 = vpop.permute.xlu0 %898  ;;  %v1538_v38 = vsel %vm1520_vm9, %v1505_v37, %v1124_v49  ;;  %v1555_v63 = vsel %vm1553_vm10, %v1522_v4, %v1182_v57  ;;  %v4296_v49 = vld [vmem:[#allocation46_spill] sm:$0xff]  ;;  %v4305_v4 = vld [vmem:[#allocation83_spill] sm:$0xff] }
 0x16c   : > { %v3443_v18 = vpop.permute.xlu1 %930  ;;  %v1571_v2 = vsel %vm1553_vm10, %v1538_v38, %v1214_v62  ;;  %v4297_v57 = vld [vmem:[#allocation58_spill] sm:$0xff] }
 0x16d   : > { %1281 = vrot.lane.b32.xlu0 %v4290_v42, %s2231_s8  ;;  %v4303_v37 = vld [vmem:[#allocation78_spill] sm:$0xff] }
 0x16e   : > { %1313 = vrot.lane.b32.xlu1 %v4293_v0, %s2231_s8 }
 0x16f   : > { %v998_v53 = vpop.permute.xlu0 %997 }
 0x170   : > { %v1030_v61 = vpop.permute.xlu1 %1029 }
 0x171   : > { %910 = vrot.lane.b32.xlu0 %v4288_v6, %s2227_s21 }
 0x172   : > { %942 = vrot.lane.b32.xlu1 %v4289_v9, %s2227_s21 }
 0x173   : > { %v1272_v55 = vpop.permute.xlu0 %1271 }
 0x174   : > { %v1588_v46 = vsel %vm1586_vm11, %v1555_v63, %v1272_v55  ;;  %v1304_v10 = vpop.permute.xlu1 %1303  ;;  %v4306_v63 = vld [vmem:[#allocation87_spill] sm:$0xff] }
 0x175   : > { %v1604_v6 = vsel %vm1586_vm11, %v1571_v2, %v1304_v10  ;;  %1009 = vrot.lane.b32.xlu0 %v4290_v42, %s2228_s22  ;;  %2139 = vmatmul.mubr.msk.f32.vlgmr.msra.gmra.mrb[0].mxu0 %vm1631_vm12, %v1588_v46 }
 0x176   : > { %1041 = vrot.lane.b32.xlu1 %v4293_v0, %s2228_s22  ;;  %2163 = vmatmul.mubr.msk.f32.vlgmr.msra.gmra.mrb[0].mxu1 %vm1631_vm12, %v1604_v6 }
 0x177   : > { %v1000_v54 = vpop.permute.xlu0 %999 }
 0x178   : > { %v1032_v12 = vpop.permute.xlu1 %1031 }
 0x179   : > { %1283 = vrot.lane.b32.xlu0 %v4296_v49, %s2231_s8 }
 0x17a   : > { %1315 = vrot.lane.b32.xlu1 %v4297_v57, %s2231_s8 }
 0x17b   : > { %v1094_v62 = vpop.permute.xlu0 %1093 }
 0x17c   : > { %v1126_v9 = vpop.permute.xlu1 %1125 }
 0x17d   : > { %1011 = vrot.lane.b32.xlu0 %v4296_v49, %s2228_s22 }
 0x17e   : > { %1043 = vrot.lane.b32.xlu1 %v4297_v57, %s2228_s22 }
 0x17f   : > { %v1096_v42 = vpop.permute.xlu0 %1095 }
 0x180   : > { %v1128_v39 = vpop.permute.xlu1 %1127 }
 0x181   : > { %1105 = vrot.lane.b32.xlu0 %v2384_v16, %s2229_s23  ;;  %v4300_v16 = vld [vmem:[#allocation11_spill] sm:$0xff] }
 0x182   : > { %1137 = vrot.lane.b32.xlu1 %v4266_v29, %s2229_s23  ;;  %v4301_v29 = vld [vmem:[#allocation67_spill] sm:$0xff] }
 0x183   : > { %v1184_v0 = vpop.permute.xlu0 %1183  ;;  %v1376_v3 = vsel %vm1359_vm4, %v4302_v20, %v4301_v29 }
 0x184   : > { %v1216_v25 = vpop.permute.xlu1 %1215  ;;  %v1407_v38 = vsel %vm1390_vm5, %v1376_v3, %v4305_v4  ;;  %v4313_v4 = vld [vmem:[#allocation16_spill] sm:$0xff] }
 0x185   : > { %1107 = vrot.lane.b32.xlu0 %v2381_v15, %s2229_s23  ;;  %v1393_v15 = vsel %vm1390_vm5, %v1362_v45, %v4303_v37  ;;  %v1440_v46 = vsel %vm1421_vm6, %v1407_v38, %v3239_v56 }
 0x186   : > { %1139 = vrot.lane.b32.xlu1 %v4269_v22, %s2229_s23  ;;  %v4304_v22 = vld [vmem:[#allocation39_spill] sm:$0xff]  ;;  %v1424_v55 = vsel %vm1421_vm6, %v1393_v15, %v4306_v63  ;;  %v1473_v49 = vsel %vm1454_vm7, %v1440_v46, %v3405_v11  ;;  %v4314_v63 = vld [vmem:[#allocation80_spill] sm:$0xff] }
 0x187   : > { %v3499_v43 = vpop.permute.xlu0 %900  ;;  %v1457_v10 = vsel %vm1454_vm7, %v1424_v55, %v3403_v60  ;;  %v1506_v32 = vsel %vm1487_vm8, %v1473_v49, %v1030_v61  ;;  %v4308_v61 = vld [vmem:[#allocation40_spill] sm:$0xff]  ;;  %v4311_v15 = vld [vmem:[#allocation47_spill] sm:$0xff] }
 0x188   : > { %v3501_v7 = vpop.permute.xlu1 %932  ;;  %v1490_v57 = vsel %vm1487_vm8, %v1457_v10, %v998_v53  ;;  %v1539_v56 = vsel %vm1520_vm9, %v1506_v32, %v1126_v9  ;;  %v4315_v46 = vld [vmem:[#allocation59_spill] sm:$0xff]  ;;  %v4316_v10 = vld [vmem:[#allocation84_spill] sm:$0xff] }
 0x189   : > { %1195 = vrot.lane.b32.xlu0 %v4300_v16, %s2230_s24  ;;  %v1523_v35 = vsel %vm1520_vm9, %v1490_v57, %v1094_v62  ;;  %v1572_v29 = vsel %vm1553_vm10, %v1539_v56, %v1216_v25  ;;  %v4310_v25 = vld [vmem:[#allocation2_spill] sm:$0xff]  ;;  %v4317_v57 = vld [vmem:[#allocation88_spill] sm:$0xff] }
 0x18a   : > { %1227 = vrot.lane.b32.xlu1 %v4304_v22, %s2230_s24  ;;  %v1556_v60 = vsel %vm1553_vm10, %v1523_v35, %v1184_v0  ;;  %v4309_v0 = vld [vmem:[#allocation64_spill] sm:$0xff] }
 0x18b   : > { %v1186_v2 = vpop.permute.xlu0 %1185  ;;  %v1363_v37 = vsel %vm1359_vm4, %v4310_v25, %v4309_v0 }
 0x18c   : > { %v1218_v6 = vpop.permute.xlu1 %1217  ;;  %v1394_v55 = vsel %vm1390_vm5, %v1363_v37, %v4314_v63 }
 0x18d   : > { %912 = vrot.lane.b32.xlu0 %v4300_v16, %s2227_s21  ;;  %v4307_v16 = vld [vmem:[#allocation12_spill] sm:$0xff]  ;;  %v1425_v32 = vsel %vm1421_vm6, %v1394_v55, %v4317_v57 }
 0x18e   : > { %944 = vrot.lane.b32.xlu1 %v4304_v22, %s2227_s21  ;;  %v4312_v22 = vld [vmem:[#allocation68_spill] sm:$0xff] }
 0x18f   : > { %v1274_v45 = vpop.permute.xlu0 %1273  ;;  %v1377_v38 = vsel %vm1359_vm4, %v4313_v4, %v4312_v22 }
 0x190   : > { %v1589_v11 = vsel %vm1586_vm11, %v1556_v60, %v1274_v45  ;;  %v1306_v53 = vpop.permute.xlu1 %1305  ;;  %v1408_v49 = vsel %vm1390_vm5, %v1377_v38, %v4316_v10  ;;  %v1458_v60 = vsel %vm1454_vm7, %v1425_v32, %v3441_v5 }
 0x191   : > { %v1605_v3 = vsel %vm1586_vm11, %v1572_v29, %v1306_v53  ;;  %1197 = vrot.lane.b32.xlu0 %v4307_v16, %s2230_s24  ;;  %2141 = vmatprep.mubr.msk.f32.mxu0 %vm1631_vm12, %v1589_v11  ;;  %v1441_v56 = vsel %vm1421_vm6, %v1408_v49, %v3241_v48  ;;  %v1491_v11 = vsel %vm1487_vm8, %v1458_v60, %v1000_v54 }
 0x192   : > { %1229 = vrot.lane.b32.xlu1 %v4308_v61, %s2230_s24  ;;  %2165 = vmatprep.mubr.msk.f32.mxu1 %vm1631_vm12, %v1605_v3  ;;  %v1474_v29 = vsel %vm1454_vm7, %v1441_v56, %v3443_v18  ;;  %v1524_v3 = vsel %vm1520_vm9, %v1491_v11, %v1096_v42 }
 0x193   : > { %v3543_v62 = vpop.permute.xlu0 %902  ;;  %v1507_v53 = vsel %vm1487_vm8, %v1474_v29, %v1032_v12  ;;  %v1557_v5 = vsel %vm1553_vm10, %v1524_v3, %v1186_v2  ;;  %v4319_v2 = vld [vmem:[#allocation60_spill] sm:$0xff]  ;;  %v4322_v29 = vld [vmem:[#allocation18_spill] sm:$0xff]  ;;  %v4324_v3 = vld [vmem:[#allocation49_spill] sm:$0xff] }
 0x194   : > { %v3545_v9 = vpop.permute.xlu1 %934  ;;  %v1540_v48 = vsel %vm1520_vm9, %v1507_v53, %v1128_v39  ;;  %v4318_v39 = vld [vmem:[#allocation48_spill] sm:$0xff] }
 0x195   : > { %1285 = vrot.lane.b32.xlu0 %v4311_v15, %s2231_s8  ;;  %v1573_v25 = vsel %vm1553_vm10, %v1540_v48, %v1218_v6  ;;  %v4325_v48 = vld [vmem:[#allocation61_spill] sm:$0xff] }
 0x196   : > { %1317 = vrot.lane.b32.xlu1 %v4315_v46, %s2231_s8 }
 0x197   : > { %v1002_v35 = vpop.permute.xlu0 %1001 }
 0x198   : > { %v1034_v45 = vpop.permute.xlu1 %1033 }
 0x199   : > { %914 = vrot.lane.b32.xlu0 %v4307_v16, %s2227_s21 }
 0x19a   : > { %946 = vrot.lane.b32.xlu1 %v4308_v61, %s2227_s21 }
 0x19b   : > { %v1276_v0 = vpop.permute.xlu0 %1275 }
 0x19c   : > { %v1590_v18 = vsel %vm1586_vm11, %v1557_v5, %v1276_v0  ;;  %v1308_v54 = vpop.permute.xlu1 %1307  ;;  %v1460_v0 = vsel %vm1454_vm7, %v3125_v27, %v3543_v62 }
 0x19d   : > { %v1606_v37 = vsel %vm1586_vm11, %v1573_v25, %v1308_v54  ;;  %1013 = vrot.lane.b32.xlu0 %v4311_v15, %s2228_s22  ;;  %2142 = vmatmul.mubr.msk.f32.gmra.mrb[2].mxu0 %vm1631_vm12, %v1590_v18  ;;  %v1476_v18 = vsel %vm1454_vm7, %v3261_v47, %v3545_v9 }
 0x19e   : > { %1045 = vrot.lane.b32.xlu1 %v4315_v46, %s2228_s22  ;;  %2166 = vmatmul.mubr.msk.f32.gmra.mrb[2].mxu1 %vm1631_vm12, %v1606_v37  ;;  %v4320_v46 = vld [vmem:[#allocation17_spill] sm:$0xff] }
 0x19f   : > { %v1004_v12 = vpop.permute.xlu0 %1003 }
 0x1a0   : > { %v1036_v42 = vpop.permute.xlu1 %1035  ;;  %v1493_v54 = vsel %vm1487_vm8, %v1460_v0, %v1004_v12 }
 0x1a1   : > { %1287 = vrot.lane.b32.xlu0 %v4318_v39, %s2231_s8  ;;  %v1509_v37 = vsel %vm1487_vm8, %v1476_v18, %v1036_v42 }
 0x1a2   : > { %1319 = vrot.lane.b32.xlu1 %v4319_v2, %s2231_s8 }
 0x1a3   : > { %v1098_v6 = vpop.permute.xlu0 %1097 }
 0x1a4   : > { %v1130_v16 = vpop.permute.xlu1 %1129 }
 0x1a5   : > { %1015 = vrot.lane.b32.xlu0 %v4318_v39, %s2228_s22 }
 0x1a6   : > { %1047 = vrot.lane.b32.xlu1 %v4319_v2, %s2228_s22 }
 0x1a7   : > { %v1100_v61 = vpop.permute.xlu0 %1099 }
 0x1a8   : > { %v1132_v15 = vpop.permute.xlu1 %1131  ;;  %v1526_v39 = vsel %vm1520_vm9, %v1493_v54, %v1100_v61  ;;  %v4326_v61 = vld [vmem:[#allocation50_spill] sm:$0xff] }
 0x1a9   : > { %1109 = vrot.lane.b32.xlu0 %v2410_v41, %s2229_s23  ;;  %v4321_v41 = vld [vmem:[#allocation41_spill] sm:$0xff]  ;;  %v1542_v2 = vsel %vm1520_vm9, %v1509_v37, %v1132_v15  ;;  %v4327_v15 = vld [vmem:[#allocation62_spill] sm:$0xff] }
 0x1aa   : > { %1141 = vrot.lane.b32.xlu1 %v4272_v13, %s2229_s23  ;;  %v1459_v13 = vsel %vm1454_vm7, %v3121_v14, %v3499_v43 }
 0x1ab   : > { %v1188_v22 = vpop.permute.xlu0 %1187 }
 0x1ac   : > { %v1220_v38 = vpop.permute.xlu1 %1219 }
 0x1ad   : > { %1111 = vrot.lane.b32.xlu0 %v2406_v36, %s2229_s23  ;;  %v1475_v36 = vsel %vm1454_vm7, %v3258_v44, %v3501_v7 }
 0x1ae   : > { %1143 = vrot.lane.b32.xlu1 %v4274_v17, %s2229_s23  ;;  %v1492_v17 = vsel %vm1487_vm8, %v1459_v13, %v1002_v35  ;;  %v1508_v57 = vsel %vm1487_vm8, %v1475_v36, %v1034_v45  ;;  %v4323_v45 = vld [vmem:[#allocation42_spill] sm:$0xff] }
 0x1af   : > { %v3603_v63 = vpop.permute.xlu0 %904  ;;  %v1525_v32 = vsel %vm1520_vm9, %v1492_v17, %v1098_v6  ;;  %v1541_v56 = vsel %vm1520_vm9, %v1508_v57, %v1130_v16  ;;  %v4330_v57 = vld [vmem:[#allocation76_spill] sm:$0xff] }
 0x1b0   : > { %v3605_v55 = vpop.permute.xlu1 %936  ;;  %v1558_v14 = vsel %vm1553_vm10, %v1525_v32, %v1188_v22  ;;  %v1574_v60 = vsel %vm1553_vm10, %v1541_v56, %v1220_v38  ;;  %v378_v32 = vrot.slane %v4330_v57, 5 }
 0x1b1   : > { %1199 = vrot.lane.b32.xlu0 %v4320_v46, %s2230_s24 }
 0x1b2   : > { %1231 = vrot.lane.b32.xlu1 %v4321_v41, %s2230_s24 }
 0x1b3   : > { %v1190_v10 = vpop.permute.xlu0 %1189 }
 0x1b4   : > { %v1222_v49 = vpop.permute.xlu1 %1221  ;;  %v1559_v27 = vsel %vm1553_vm10, %v1526_v39, %v1190_v10  ;;  %v4328_v10 = vld [vmem:[#allocation77_spill] sm:$0xff] }
 0x1b5   : > { %916 = vrot.lane.b32.xlu0 %v4320_v46, %s2227_s21  ;;  %v1575_v6 = vsel %vm1553_vm10, %v1542_v2, %v1222_v49  ;;  %v887_v13 = vrot.slane %v4328_v10, 1  ;;  %v4329_v49 = vld [vmem:[#allocation79_spill] sm:$0xff]  ;;  %v988_v0 = vrot.slane %v4328_v10, 2 }
 0x1b6   : > { %948 = vrot.lane.b32.xlu1 %v4321_v41, %s2227_s21  ;;  %v888_v36 = vrot.slane %v4329_v49, 1 }
 0x1b7   : > { %v1278_v43 = vpop.permute.xlu0 %1277 }
 0x1b8   : > { %v1591_v44 = vsel %vm1586_vm11, %v1558_v14, %v1278_v43  ;;  %v1310_v7 = vpop.permute.xlu1 %1309 }
 0x1b9   : > { %v1607_v35 = vsel %vm1586_vm11, %v1574_v60, %v1310_v7  ;;  %1201 = vrot.lane.b32.xlu0 %v4322_v29, %s2230_s24  ;;  %2144 = vmatprep.mubr.msk.f32.mxu0 %vm1631_vm12, %v1591_v44  ;;  %v4331_v60 = vrot.slane %v4330_v57, 7  ;;  %v4332_v7 = vld [vmem:[#allocation19_spill] sm:$0xff]  ;;  %v4335_v57 = vld [vmem:[#allocation52_spill] sm:$0xff] }
 0x1ba   : > { %1233 = vrot.lane.b32.xlu1 %v4323_v45, %s2230_s24  ;;  %2168 = vmatprep.mubr.msk.f32.mxu1 %vm1631_vm12, %v1607_v35 }
 0x1bb   : > { %v3635_v11 = vpop.permute.xlu0 %906  ;;  %v426_v44 = vsel %vm267_vm0, %v4331_v60, %v378_v32 }
 0x1bc   : > { %v3637_v53 = vpop.permute.xlu1 %938 }
 0x1bd   : > { %1289 = vrot.lane.b32.xlu0 %v4324_v3, %s2231_s8 }
 0x1be   : > { %1321 = vrot.lane.b32.xlu1 %v4325_v48, %s2231_s8 }
 0x1bf   : > { %v1006_v5 = vpop.permute.xlu0 %1005 }
 0x1c0   : > { %v1038_v25 = vpop.permute.xlu1 %1037 }
 0x1c1   : > { %918 = vrot.lane.b32.xlu0 %v4322_v29, %s2227_s21  ;;  %v1461_v29 = vsel %vm1454_vm7, %v3142_v40, %v3603_v63  ;;  %v989_v40 = vrot.slane %v4329_v49, 2 }
 0x1c2   : > { %950 = vrot.lane.b32.xlu1 %v4323_v45, %s2227_s21 }
 0x1c3   : > { %v1280_v62 = vpop.permute.xlu0 %1279 }
 0x1c4   : > { %v1592_v47 = vsel %vm1586_vm11, %v1559_v27, %v1280_v62  ;;  %v1312_v9 = vpop.permute.xlu1 %1311  ;;  %v4333_v27 = vld [vmem:[#allocation20_spill] sm:$0xff] }
 0x1c5   : > { %v1608_v12 = vsel %vm1586_vm11, %v1575_v6, %v1312_v9  ;;  %1017 = vrot.lane.b32.xlu0 %v4324_v3, %s2228_s22  ;;  %2145 = vmatmul.mubr.msk.f32.gmra.mrb[4].mxu0 %vm1631_vm12, %v1592_v47  ;;  %v1477_v3 = vsel %vm1454_vm7, %v3278_v1, %v3605_v55  ;;  %v990_v6 = vsel %vm623_vm2, %v988_v0, %v989_v40  ;;  %v4334_v9 = vld [vmem:[#allocation51_spill] sm:$0xff] }
 0x1c6   : > { %1049 = vrot.lane.b32.xlu1 %v4325_v48, %s2228_s22  ;;  %2169 = vmatmul.mubr.msk.f32.gmra.mrb[4].mxu1 %vm1631_vm12, %v1608_v12  ;;  %v1494_v48 = vsel %vm1487_vm8, %v1461_v29, %v1006_v5  ;;  %v1510_v18 = vsel %vm1487_vm8, %v1477_v3, %v1038_v25  ;;  %v4338_v3 = vld [vmem:[#allocation53_spill] sm:$0xff] }
 0x1c7   : > { %v1008_v42 = vpop.permute.xlu0 %1007 }
 0x1c8   : > { %v1040_v16 = vpop.permute.xlu1 %1039 }
 0x1c9   : > { %1291 = vrot.lane.b32.xlu0 %v4326_v61, %s2231_s8 }
 0x1ca   : > { %1323 = vrot.lane.b32.xlu1 %v4327_v15, %s2231_s8 }
 0x1cb   : > { %v1102_v22 = vpop.permute.xlu0 %1101 }
 0x1cc   : > { %v1134_v38 = vpop.permute.xlu1 %1133  ;;  %v1527_v54 = vsel %vm1520_vm9, %v1494_v48, %v1102_v22  ;;  %v1478_v22 = vsel %vm1454_vm7, %v3281_v23, %v3637_v53  ;;  %v4339_v48 = vld [vmem:[#allocation54_spill] sm:$0xff] }
 0x1cd   : > { %1019 = vrot.lane.b32.xlu0 %v4326_v61, %s2228_s22  ;;  %v1543_v63 = vsel %vm1520_vm9, %v1510_v18, %v1134_v38  ;;  %v1462_v61 = vsel %vm1454_vm7, %v3145_v33, %v3635_v11 }
 0x1ce   : > { %1051 = vrot.lane.b32.xlu1 %v4327_v15, %s2228_s22  ;;  %v1495_v38 = vsel %vm1487_vm8, %v1462_v61, %v1008_v42 }
 0x1cf   : > { %v1104_v46 = vpop.permute.xlu0 %1103 }
 0x1d0   : > { %v1136_v41 = vpop.permute.xlu1 %1135 }
 0x1d1   : > { %1113 = vrot.lane.b32.xlu0 %v4284_v31, %s2229_s23  ;;  %v889_v31 = vsel %vm457_vm1, %v887_v13, %v888_v36  ;;  %v1528_v13 = vsel %vm1520_vm9, %v1495_v38, %v1104_v46 }
 0x1d2   : > { %1145 = vrot.lane.b32.xlu1 %v4328_v10, %s2229_s23  ;;  %v1511_v10 = vsel %vm1487_vm8, %v1478_v22, %v1040_v16 }
 0x1d3   : > { %v1192_v17 = vpop.permute.xlu0 %1191 }
 0x1d4   : > { %v1224_v56 = vpop.permute.xlu1 %1223  ;;  %v1560_v37 = vsel %vm1553_vm10, %v1527_v54, %v1192_v17 }
 0x1d5   : > { %1115 = vrot.lane.b32.xlu0 %v4292_v34, %s2229_s23  ;;  %v890_v34 = vrot.slane %v426_v44, 1  ;;  %v1576_v5 = vsel %vm1553_vm10, %v1543_v63, %v1224_v56 }
 0x1d6   : > { %1147 = vrot.lane.b32.xlu1 %v4329_v49, %s2229_s23  ;;  %v1544_v49 = vsel %vm1520_vm9, %v1511_v10, %v1136_v41 }
 0x1d7   : > { %v3686_v14 = vpop.permute.xlu0 %908  ;;  %v891_v55 = vsel %vm457_vm1, %v888_v36, %v890_v34  ;;  %v991_v36 = vrot.slane %v426_v44, 2  ;;  %v4337_v34 = vld [vmem:[#allocation22_spill] sm:$0xff] }
 0x1d8   : > { %v3689_v43 = vpop.permute.xlu1 %940 }
 0x1d9   : > { %1203 = vrot.lane.b32.xlu0 %v4332_v7, %s2230_s24  ;;  %v992_v46 = vsel %vm623_vm2, %v989_v40, %v991_v36  ;;  %v1479_v18 = vsel %vm1454_vm7, %v3298_v52, %v3689_v43 }
 0x1da   : > { %1235 = vrot.lane.b32.xlu1 %v889_v31, %s2230_s24 }
 0x1db   : > { %v1194_v35 = vpop.permute.xlu0 %1193 }
 0x1dc   : > { %v1226_v45 = vpop.permute.xlu1 %1225  ;;  %v1561_v33 = vsel %vm1553_vm10, %v1528_v13, %v1194_v35  ;;  %v4336_v35 = vld [vmem:[#allocation21_spill] sm:$0xff] }
 0x1dd   : > { %920 = vrot.lane.b32.xlu0 %v4332_v7, %s2227_s21  ;;  %v1577_v17 = vsel %vm1553_vm10, %v1544_v49, %v1226_v45 }
 0x1de   : > { %952 = vrot.lane.b32.xlu1 %v889_v31, %s2227_s21 }
 0x1df   : > { %v1282_v1 = vpop.permute.xlu0 %1281 }
 0x1e0   : > { %v1593_v39 = vsel %vm1586_vm11, %v1560_v37, %v1282_v1  ;;  %v1314_v2 = vpop.permute.xlu1 %1313 }
 0x1e1   : > { %v1609_v25 = vsel %vm1586_vm11, %v1576_v5, %v1314_v2  ;;  %1205 = vrot.lane.b32.xlu0 %v4333_v27, %s2230_s24  ;;  %2147 = vmatprep.mubr.msk.f32.mxu0 %vm1631_vm12, %v1593_v39 }
 0x1e2   : > { %1237 = vrot.lane.b32.xlu1 %v891_v55, %s2230_s24  ;;  %2171 = vmatprep.mubr.msk.f32.mxu1 %vm1631_vm12, %v1609_v25 }
 0x1e3   : > { %v3722_v62 = vpop.permute.xlu0 %910 }
 0x1e4   : > { %v3725_v47 = vpop.permute.xlu1 %942  ;;  %v1464_v25 = vsel %vm1454_vm7, %v3165_v30, %v3722_v62 }
 0x1e5   : > { %1293 = vrot.lane.b32.xlu0 %v4334_v9, %s2231_s8 }
 0x1e6   : > { %1325 = vrot.lane.b32.xlu1 %v990_v6, %s2231_s8 }
 0x1e7   : > { %v1010_v12 = vpop.permute.xlu0 %1009 }
 0x1e8   : > { %v1042_v15 = vpop.permute.xlu1 %1041 }
 0x1e9   : > { %922 = vrot.lane.b32.xlu0 %v4333_v27, %s2227_s21  ;;  %v1512_v40 = vsel %vm1487_vm8, %v1479_v18, %v1042_v15 }
 0x1ea   : > { %954 = vrot.lane.b32.xlu1 %v891_v55, %s2227_s21 }
 0x1eb   : > { %v1284_v11 = vpop.permute.xlu0 %1283 }
 0x1ec   : > { %v1594_v23 = vsel %vm1586_vm11, %v1561_v33, %v1284_v11  ;;  %v1316_v53 = vpop.permute.xlu1 %1315 }
 0x1ed   : > { %v1610_v42 = vsel %vm1586_vm11, %v1577_v17, %v1316_v53  ;;  %1021 = vrot.lane.b32.xlu0 %v4334_v9, %s2228_s22  ;;  %2148 = vmatmul.mubr.msk.f32.gmra.mrb[6].mxu0 %vm1631_vm12, %v1594_v23 }
 0x1ee   : > { %1053 = vrot.lane.b32.xlu1 %v990_v6, %s2228_s22  ;;  %2172 = vmatmul.mubr.msk.f32.gmra.mrb[6].mxu1 %vm1631_vm12, %v1610_v42  ;;  %v1480_v6 = vsel %vm1454_vm7, %v3301_v19, %v3725_v47 }
 0x1ef   : > { %v1012_v16 = vpop.permute.xlu0 %1011 }
 0x1f0   : > { %v1044_v41 = vpop.permute.xlu1 %1043  ;;  %v1497_v9 = vsel %vm1487_vm8, %v1464_v25, %v1012_v16 }
 0x1f1   : > { %1295 = vrot.lane.b32.xlu0 %v4335_v57, %s2231_s8 }
 0x1f2   : > { %1327 = vrot.lane.b32.xlu1 %v992_v46, %s2231_s8 }
 0x1f3   : > { %v1106_v32 = vpop.permute.xlu0 %1105 }
 0x1f4   : > { %v1138_v56 = vpop.permute.xlu1 %1137 }
 0x1f5   : > { %1023 = vrot.lane.b32.xlu0 %v4335_v57, %s2228_s22  ;;  %v1545_v37 = vsel %vm1520_vm9, %v1512_v40, %v1138_v56 }
 0x1f6   : > { %1055 = vrot.lane.b32.xlu1 %v992_v46, %s2228_s22 }
 0x1f7   : > { %v1108_v31 = vpop.permute.xlu0 %1107 }
 0x1f8   : > { %v1140_v60 = vpop.permute.xlu1 %1139  ;;  %v1530_v61 = vsel %vm1520_vm9, %v1497_v9, %v1108_v31 }
 0x1f9   : > { %1117 = vrot.lane.b32.xlu0 %v4302_v20, %s2229_s23 }
 0x1fa   : > { %1119 = vrot.lane.b32.xlu1 %v4313_v4, %s2229_s23  ;;  %v1463_v4 = vsel %vm1454_vm7, %v3162_v59, %v3686_v14 }
 0x1fb   : > { %v1196_v44 = vpop.permute.xlu0 %1195  ;;  %v1496_v54 = vsel %vm1487_vm8, %v1463_v4, %v1010_v12  ;;  %v1513_v12 = vsel %vm1487_vm8, %v1480_v6, %v1044_v41 }
 0x1fc   : > { %v1228_v7 = vpop.permute.xlu1 %1227  ;;  %v1529_v63 = vsel %vm1520_vm9, %v1496_v54, %v1106_v32  ;;  %v1546_v15 = vsel %vm1520_vm9, %v1513_v12, %v1140_v60 }
 0x1fd   : > { %1207 = vrot.lane.b32.xlu0 %v4336_v35, %s2230_s24  ;;  %v1562_v1 = vsel %vm1553_vm10, %v1529_v63, %v1196_v44  ;;  %v1578_v5 = vsel %vm1553_vm10, %v1545_v37, %v1228_v7 }
 0x1fe   : > { %1209 = vrot.lane.b32.xlu1 %v4337_v34, %s2230_s24 }
 0x1ff   : > { %v913_v29 = vpop.permute.xlu0 %912 }
 0x200   : > { %v945_v45 = vpop.permute.xlu1 %944  ;;  %v1465_v46 = vsel %vm1454_vm7, %v3182_v50, %v913_v29 }
 0x201   : > { %1297 = vrot.lane.b32.xlu0 %v4338_v3, %s2231_s8  ;;  %v1481_v57 = vsel %vm1454_vm7, %v3318_v51, %v945_v45 }
 0x202   : > { %1299 = vrot.lane.b32.xlu1 %v4339_v48, %s2231_s8 }
 0x203   : > { %v1198_v20 = vpop.permute.xlu0 %1197 }
 0x204   : > { %v1230_v0 = vpop.permute.xlu1 %1229  ;;  %v1563_v22 = vsel %vm1553_vm10, %v1530_v61, %v1198_v20 }
 0x205   : > { %v1579_v10 = vsel %vm1553_vm10, %v1546_v15, %v1230_v0 }
 0x207   : > { %v1286_v55 = vpop.permute.xlu0 %1285 }
 0x208   : > { %v1595_v59 = vsel %vm1586_vm11, %v1562_v1, %v1286_v55  ;;  %v1318_v14 = vpop.permute.xlu1 %1317 }
 0x209   : > { %v1611_v39 = vsel %vm1586_vm11, %v1578_v5, %v1318_v14  ;;  %2150 = vmatprep.mubr.msk.f32.mxu0 %vm1631_vm12, %v1595_v59 }
 0x20a   : > { %2174 = vmatprep.mubr.msk.f32.mxu1 %vm1631_vm12, %v1611_v39 }
 0x20b   : > { %v915_v52 = vpop.permute.xlu0 %914 }
 0x20c   : > { %v947_v43 = vpop.permute.xlu1 %946  ;;  %v1466_v48 = vsel %vm1454_vm7, %v3185_v28, %v915_v52  ;;  %v3856_v52 = vld [vmem:[%s4030_s2] ss:$0 sm:$0xff] }
 0x20d   : > { %v1482_v4 = vsel %vm1454_vm7, %v3321_v21, %v947_v43 }
 0x20f   : > { %v1014_v2 = vpop.permute.xlu0 %1013 }
 0x210   : > { %v1046_v27 = vpop.permute.xlu1 %1045  ;;  %v1498_v32 = vsel %vm1487_vm8, %v1465_v46, %v1014_v2 }
 0x211   : > { %v1514_v56 = vsel %vm1487_vm8, %v1481_v57, %v1046_v27 }
 0x213   : > { %v1288_v38 = vpop.permute.xlu0 %1287 }
 0x214   : > { %v1596_v30 = vsel %vm1586_vm11, %v1563_v22, %v1288_v38  ;;  %v1320_v62 = vpop.permute.xlu1 %1319 }
 0x215   : > { %v1612_v13 = vsel %vm1586_vm11, %v1579_v10, %v1320_v62  ;;  %2151 = vmatmul.mubr.msk.f32.gmra.mrb[8].mxu0 %vm1631_vm12, %v1596_v30 }
 0x216   : > { %2175 = vmatmul.mubr.msk.f32.gmra.mrb[8].mxu1 %vm1631_vm12, %v1612_v13 }
 0x217   : > { %v1016_v19 = vpop.permute.xlu0 %1015 }
 0x218   : > { %v1048_v47 = vpop.permute.xlu1 %1047  ;;  %v1499_v0 = vsel %vm1487_vm8, %v1466_v48, %v1016_v19 }
 0x219   : > { %v1515_v18 = vsel %vm1487_vm8, %v1482_v4, %v1048_v47 }
 0x21b   : > { %v1110_v49 = vpop.permute.xlu0 %1109 }
 0x21c   : > { %v3803_v33 = vpop.permute.xlu1 %1141  ;;  %v1531_v31 = vsel %vm1520_vm9, %v1498_v32, %v1110_v49 }
 0x21d   : > { %v1547_v60 = vsel %vm1520_vm9, %v1514_v56, %v3803_v33 }
 0x21f   : > { %v1112_v11 = vpop.permute.xlu0 %1111 }
 0x220   : > { %v3805_v36 = vpop.permute.xlu1 %1143  ;;  %v1532_v54 = vsel %vm1520_vm9, %v1499_v0, %v1112_v11 }
 0x221   : > { %v1548_v40 = vsel %vm1520_vm9, %v1515_v18, %v3805_v36 }
 0x223   : > { %v1200_v17 = vpop.permute.xlu0 %1199 }
 0x224   : > { %v3807_v23 = vpop.permute.xlu1 %1231  ;;  %v1564_v44 = vsel %vm1553_vm10, %v1531_v31, %v1200_v17 }
 0x225   : > { %v1580_v50 = vsel %vm1553_vm10, %v1547_v60, %v3807_v23 }
 0x227   : > { %v917_v53 = vpop.permute.xlu0 %916 }
 0x228   : > { %v3809_v42 = vpop.permute.xlu1 %948  ;;  %v1467_v19 = vsel %vm1454_vm7, %v3202_v24, %v917_v53 }
 0x229   : > { %v1483_v49 = vsel %vm1454_vm7, %v3338_v8, %v3809_v42 }
 0x22b   : > { %v1202_v16 = vpop.permute.xlu0 %1201 }
 0x22c   : > { %v3813_v41 = vpop.permute.xlu1 %1233  ;;  %v1565_v63 = vsel %vm1553_vm10, %v1532_v54, %v1202_v16 }
 0x22d   : > { %v1581_v28 = vsel %vm1553_vm10, %v1548_v40, %v3813_v41 }
 0x22f   : > { %v1290_v7 = vpop.permute.xlu0 %1289 }
 0x230   : > { %v1597_v35 = vsel %vm1586_vm11, %v1564_v44, %v1290_v7  ;;  %v3826_v34 = vpop.permute.xlu1 %1321 }
 0x231   : > { %v1613_v51 = vsel %vm1586_vm11, %v1580_v50, %v3826_v34  ;;  %2153 = vmatprep.mubr.msk.f32.mxu0 %vm1631_vm12, %v1597_v35  ;;  %v4340_v35 = vld [vmem:[#allocation6_spill] sm:$0xff] }
 0x232   : > { %2177 = vmatprep.mubr.msk.f32.mxu1 %vm1631_vm12, %v1613_v51 }
 0x233   : > { %v919_v29 = vpop.permute.xlu0 %918 }
 0x234   : > { %v3832_v45 = vpop.permute.xlu1 %950  ;;  %v1468_v44 = vsel %vm1454_vm7, %v3205_v58, %v919_v29 }
 0x235   : > { %v1484_v51 = vsel %vm1454_vm7, %v4340_v35, %v3832_v45 }
 0x237   : > { %v1018_v3 = vpop.permute.xlu0 %1017 }
 0x238   : > { %v1050_v20 = vpop.permute.xlu1 %1049  ;;  %v1500_v11 = vsel %vm1487_vm8, %v1467_v19, %v1018_v3 }
 0x239   : > { %v1516_v17 = vsel %vm1487_vm8, %v1483_v49, %v1050_v20 }
 0x23b   : > { %v1292_v37 = vpop.permute.xlu0 %1291 }
 0x23c   : > { %v1598_v1 = vsel %vm1586_vm11, %v1565_v63, %v1292_v37  ;;  %v3847_v55 = vpop.permute.xlu1 %1323 }
 0x23d   : > { %v1614_v21 = vsel %vm1586_vm11, %v1581_v28, %v3847_v55  ;;  %2154 = vmatmul.mubr.msk.f32.gmra.mrb[10].mxu0 %vm1631_vm12, %v1598_v1  ;;  %v4341_v28 = vld [vmem:[#allocation28_spill] sm:$0xff] }
 0x23e   : > { %2178 = vmatmul.mubr.msk.f32.gmra.mrb[10].mxu1 %vm1631_vm12, %v1614_v21 }
 0x23f   : > { %v1020_v5 = vpop.permute.xlu0 %1019 }
 0x240   : > { %v1052_v59 = vpop.permute.xlu1 %1051  ;;  %v1501_v3 = vsel %vm1487_vm8, %v1468_v44, %v1020_v5 }
 0x241   : > { %v1517_v20 = vsel %vm1487_vm8, %v1484_v51, %v1052_v59 }
 0x243   : > { %v1114_v14 = vpop.permute.xlu0 %1113 }
 0x244   : > { %v1146_v39 = vpop.permute.xlu1 %1145  ;;  %v1533_v16 = vsel %vm1520_vm9, %v1500_v11, %v1114_v14 }
 0x245   : > { %v1549_v46 = vsel %vm1520_vm9, %v1516_v17, %v1146_v39 }
 0x247   : > { %v1116_v43 = vpop.permute.xlu0 %1115 }
 0x248   : > { %v1148_v2 = vpop.permute.xlu1 %1147  ;;  %v2140_v25 = vpop.f32.mrb[0].mxu0  ;;  %v1534_v4 = vsel %vm1520_vm9, %v1501_v3, %v1116_v43 }
 0x249   : > { %v1804_v27 = vadd.f32 %v2140_v25, %v3856_v52  ;;  %v2164_v6 = vpop.f32.mrb[0].mxu1  ;;  %v1798_v9 = vpop.f32.mrb[1].mxu0  ;;  %v1550_v58 = vsel %vm1520_vm9, %v1517_v20, %v1148_v2  ;;  %v4342_v2 = vld [vmem:[#allocation5_spill] sm:$0xff] }
 0x24a   : > { %v1884_v12 = vadd.f32 %v2164_v6, %v3856_v52  ;;  %v1799_v61 = vadd.f32 %v3856_v52, %v1798_v9  ;;  %v1878_v15 = vpop.f32.mrb[1].mxu1  ;;  %v4343_v9 = vld [vmem:[#allocation27_spill] sm:$0xff] }
 0x24b   : > { %1958 = vst.msk [vmem:[%s3863_s16 + $0x8] sm:$0xff] %vm1390_vm5, %v1804_v27  ;;  %v1879_v22 = vadd.f32 %v3856_v52, %v1878_v15  ;;  %v1204_v38 = vpop.permute.xlu0 %1203 }
 0x24c   : > { %1974 = vst.msk [vmem:[%s3863_s16 + $0x88] sm:$0xff] %vm1390_vm5, %v1884_v12  ;;  %1957 = vst.msk [vmem:[%s3863_s16] sm:$0xff] %vm1390_vm5, %v1799_v61  ;;  %v1236_v10 = vpop.permute.xlu1 %1235  ;;  %v1566_v57 = vsel %vm1553_vm10, %v1533_v16, %v1204_v38 }
 0x24d   : > { %1973 = vst.msk [vmem:[%s3863_s16 + $0x80] sm:$0xff] %vm1390_vm5, %v1879_v22  ;;  %v1582_v56 = vsel %vm1553_vm10, %v1549_v46, %v1236_v10 }
 0x24f   : > { %v921_v30 = vpop.permute.xlu0 %920 }
 0x250   : > { %v953_v62 = vpop.permute.xlu1 %952  ;;  %v1469_v25 = vsel %vm1454_vm7, %v4342_v2, %v921_v30 }
 0x251   : > { %v1485_v7 = vsel %vm1454_vm7, %v3358_v26, %v953_v62 }
 0x253   : > { %v1206_v13 = vpop.permute.xlu0 %1205 }
 0x254   : > { %v1238_v47 = vpop.permute.xlu1 %1237  ;;  %v1567_v26 = vsel %vm1553_vm10, %v1534_v4, %v1206_v13 }
 0x255   : > { %v1583_v45 = vsel %vm1553_vm10, %v1550_v58, %v1238_v47 }
 0x257   : > { %v1294_v32 = vpop.permute.xlu0 %1293 }
 0x258   : > { %v1599_v24 = vsel %vm1586_vm11, %v1566_v57, %v1294_v32  ;;  %v1326_v53 = vpop.permute.xlu1 %1325 }
 0x259   : > { %v1615_v31 = vsel %vm1586_vm11, %v1582_v56, %v1326_v53  ;;  %2156 = vmatprep.mubr.msk.f32.mxu0 %vm1631_vm12, %v1599_v24 }
 0x25a   : > { %2180 = vmatprep.mubr.msk.f32.mxu1 %vm1631_vm12, %v1615_v31 }
 0x25b   : > { %v923_v8 = vpop.permute.xlu0 %922 }
 0x25c   : > { %v955_v42 = vpop.permute.xlu1 %954 }
 0x25f   : > { %v1022_v60 = vpop.permute.xlu0 %1021 }
 0x260   : > { %v1054_v50 = vpop.permute.xlu1 %1053  ;;  %v1502_v12 = vsel %vm1487_vm8, %v1469_v25, %v1022_v60 }
 0x261   : > { %v1518_v48 = vsel %vm1487_vm8, %v1485_v7, %v1054_v50 }
 0x262   : > { %v1551_v0 = vsel %vm1520_vm9, %v1518_v48, %v3803_v33 }
 0x263   : > { %v1296_v29 = vpop.permute.xlu0 %1295  ;;  %v1584_v18 = vsel %vm1553_vm10, %v1551_v0, %v3807_v23  ;;  %v1486_v23 = vsel %vm1454_vm7, %v4341_v28, %v955_v42 }
 0x264   : > { %v1600_v54 = vsel %vm1586_vm11, %v1567_v26, %v1296_v29  ;;  %v1328_v40 = vpop.permute.xlu1 %1327  ;;  %v1617_v33 = vsel %vm1586_vm11, %v1584_v18, %v3826_v34 }
 0x265   : > { %v1616_v63 = vsel %vm1586_vm11, %v1583_v45, %v1328_v40  ;;  %2157 = vmatmul.mubr.msk.f32.gmra.mrb[12].mxu0 %vm1631_vm12, %v1600_v54 }
 0x266   : > { %2181 = vmatmul.mubr.msk.f32.gmra.mrb[12].mxu1 %vm1631_vm12, %v1616_v63 }
 0x267   : > { %2183 = vmatprep.mubr.msk.f32.mxu1 %vm1631_vm12, %v1617_v33  ;;  %v1024_v37 = vpop.permute.xlu0 %1023 }
 0x268   : > { %v1056_v1 = vpop.permute.xlu1 %1055 }
 0x269   : > { %v1519_v21 = vsel %vm1487_vm8, %v1486_v23, %v1056_v1 }
 0x26a   : > { %v1552_v5 = vsel %vm1520_vm9, %v1519_v21, %v3805_v36  ;;  %v1470_v36 = vsel %vm1454_vm7, %v4343_v9, %v923_v8 }
 0x26b   : > { %v1118_v59 = vpop.permute.xlu0 %1117  ;;  %v1585_v14 = vsel %vm1553_vm10, %v1552_v5, %v3813_v41  ;;  %v1503_v15 = vsel %vm1487_vm8, %v1470_v36, %v1024_v37 }
 0x26c   : > { %v1120_v39 = vpop.permute.xlu1 %1119  ;;  %v1618_v34 = vsel %vm1586_vm11, %v1585_v14, %v3847_v55  ;;  %v1535_v22 = vsel %vm1520_vm9, %v1502_v12, %v1118_v59 }
 0x26d   : > { %2184 = vmatmul.mubr.msk.f32.gmra.mrb[14].mxu1 %vm1631_vm12, %v1618_v34  ;;  %v1536_v62 = vsel %vm1520_vm9, %v1503_v15, %v1120_v39 }
 0x26f   : > { %v1208_v43 = vpop.permute.xlu0 %1207 }
 0x270   : > { %v1210_v27 = vpop.permute.xlu1 %1209  ;;  %v2143_v6 = vpop.f32.mrb[2].mxu0  ;;  %v1568_v13 = vsel %vm1553_vm10, %v1535_v22, %v1208_v43 }
 0x271   : > { %v1814_v41 = vadd.f32 %v2143_v6, %v3856_v52  ;;  %v2167_v61 = vpop.f32.mrb[2].mxu1  ;;  %v1808_v55 = vpop.f32.mrb[3].mxu0  ;;  %v1569_v49 = vsel %vm1553_vm10, %v1536_v62, %v1210_v27 }
 0x272   : > { %v1894_v38 = vadd.f32 %v2167_v61, %v3856_v52  ;;  %v1809_v10 = vadd.f32 %v3856_v52, %v1808_v55  ;;  %v1888_v30 = vpop.f32.mrb[3].mxu1 }
 0x273   : > { %1960 = vst.msk [vmem:[%s3863_s16 + $0x18] sm:$0xff] %vm1390_vm5, %v1814_v41  ;;  %v1889_v19 = vadd.f32 %v3856_v52, %v1888_v30  ;;  %v1298_v47 = vpop.permute.xlu0 %1297 }
 0x274   : > { %1976 = vst.msk [vmem:[%s3863_s16 + $0x98] sm:$0xff] %vm1390_vm5, %v1894_v38  ;;  %1959 = vst.msk [vmem:[%s3863_s16 + $0x10] sm:$0xff] %vm1390_vm5, %v1809_v10  ;;  %v1601_v11 = vsel %vm1586_vm11, %v1568_v13, %v1298_v47  ;;  %v1300_v17 = vpop.permute.xlu1 %1299 }
 0x275   : > { %1975 = vst.msk [vmem:[%s3863_s16 + $0x90] sm:$0xff] %vm1390_vm5, %v1889_v19  ;;  %v1602_v16 = vsel %vm1586_vm11, %v1569_v49, %v1300_v17  ;;  %2159 = vmatprep.mubr.msk.f32.mxu0 %vm1631_vm12, %v1601_v11 }
 0x276   : > { %2160 = vmatmul.mubr.msk.f32.gmra.mrb[14].mxu0 %vm1631_vm12, %v1602_v16 }
 0x298   : > { %v2146_v46 = vpop.f32.mrb[4].mxu0 }
 0x299   : > { %v1824_v57 = vadd.f32 %v2146_v46, %v3856_v52  ;;  %v2170_v32 = vpop.f32.mrb[4].mxu1  ;;  %v1818_v56 = vpop.f32.mrb[5].mxu0 }
 0x29a   : > { %v1904_v24 = vadd.f32 %v2170_v32, %v3856_v52  ;;  %v1819_v53 = vadd.f32 %v3856_v52, %v1818_v56  ;;  %v1898_v31 = vpop.f32.mrb[5].mxu1 }
 0x29b   : > { %1962 = vst.msk [vmem:[%s3863_s16 + $0x28] sm:$0xff] %vm1390_vm5, %v1824_v57  ;;  %v1899_v8 = vadd.f32 %v3856_v52, %v1898_v31 }
 0x29c   : > { %1978 = vst.msk [vmem:[%s3863_s16 + $0xa8] sm:$0xff] %vm1390_vm5, %v1904_v24  ;;  %1961 = vst.msk [vmem:[%s3863_s16 + $0x20] sm:$0xff] %vm1390_vm5, %v1819_v53 }
 0x29d   : > { %1977 = vst.msk [vmem:[%s3863_s16 + $0xa0] sm:$0xff] %vm1390_vm5, %v1899_v8 }
 0x2c0   : > { %v2149_v42 = vpop.f32.mrb[6].mxu0 }
 0x2c1   : > { %v1834_v60 = vadd.f32 %v2149_v42, %v3856_v52  ;;  %v2173_v44 = vpop.f32.mrb[6].mxu1  ;;  %v1828_v7 = vpop.f32.mrb[7].mxu0 }
 0x2c2   : > { %v1914_v50 = vadd.f32 %v2173_v44, %v3856_v52  ;;  %v1829_v35 = vadd.f32 %v3856_v52, %v1828_v7  ;;  %v1908_v51 = vpop.f32.mrb[7].mxu1 }
 0x2c3   : > { %1964 = vst.msk [vmem:[%s3863_s16 + $0x38] sm:$0xff] %vm1390_vm5, %v1834_v60  ;;  %v1909_v3 = vadd.f32 %v3856_v52, %v1908_v51 }
 0x2c4   : > { %1980 = vst.msk [vmem:[%s3863_s16 + $0xb8] sm:$0xff] %vm1390_vm5, %v1914_v50  ;;  %1963 = vst.msk [vmem:[%s3863_s16 + $0x30] sm:$0xff] %vm1390_vm5, %v1829_v35 }
 0x2c5   : > { %1979 = vst.msk [vmem:[%s3863_s16 + $0xb0] sm:$0xff] %vm1390_vm5, %v1909_v3 }
 0x2e8   : > { %v2152_v48 = vpop.f32.mrb[8].mxu0 }
 0x2e9   : > { %v1844_v20 = vadd.f32 %v2152_v48, %v3856_v52  ;;  %v2176_v4 = vpop.f32.mrb[8].mxu1  ;;  %v1838_v0 = vpop.f32.mrb[9].mxu0 }
 0x2ea   : > { %v1924_v58 = vadd.f32 %v2176_v4, %v3856_v52  ;;  %v1839_v26 = vadd.f32 %v3856_v52, %v1838_v0  ;;  %v1918_v29 = vpop.f32.mrb[9].mxu1 }
 0x2eb   : > { %1966 = vst.msk [vmem:[%s3863_s16 + $0x48] sm:$0xff] %vm1390_vm5, %v1844_v20  ;;  %v1919_v18 = vadd.f32 %v3856_v52, %v1918_v29 }
 0x2ec   : > { %1982 = vst.msk [vmem:[%s3863_s16 + $0xc8] sm:$0xff] %vm1390_vm5, %v1924_v58  ;;  %1965 = vst.msk [vmem:[%s3863_s16 + $0x40] sm:$0xff] %vm1390_vm5, %v1839_v26 }
 0x2ed   : > { %1981 = vst.msk [vmem:[%s3863_s16 + $0xc0] sm:$0xff] %vm1390_vm5, %v1919_v18 }
 0x310   : > { %v2155_v45 = vpop.f32.mrb[10].mxu0 }
 0x311   : > { %v1854_v54 = vadd.f32 %v2155_v45, %v3856_v52  ;;  %v2179_v40 = vpop.f32.mrb[10].mxu1  ;;  %v1848_v63 = vpop.f32.mrb[11].mxu0 }
 0x312   : > { %v1934_v33 = vadd.f32 %v2179_v40, %v3856_v52  ;;  %v1849_v37 = vadd.f32 %v3856_v52, %v1848_v63  ;;  %v1928_v28 = vpop.f32.mrb[11].mxu1 }
 0x313   : > { %1968 = vst.msk [vmem:[%s3863_s16 + $0x58] sm:$0xff] %vm1390_vm5, %v1854_v54  ;;  %v1929_v23 = vadd.f32 %v3856_v52, %v1928_v28 }
 0x314   : > { %1984 = vst.msk [vmem:[%s3863_s16 + $0xd8] sm:$0xff] %vm1390_vm5, %v1934_v33  ;;  %1967 = vst.msk [vmem:[%s3863_s16 + $0x50] sm:$0xff] %vm1390_vm5, %v1849_v37 }
 0x315   : > { %1983 = vst.msk [vmem:[%s3863_s16 + $0xd0] sm:$0xff] %vm1390_vm5, %v1929_v23 }
 0x338   : > { %v2158_v1 = vpop.f32.mrb[12].mxu0 }
 0x339   : > { %v1864_v21 = vadd.f32 %v2158_v1, %v3856_v52  ;;  %v2182_v5 = vpop.f32.mrb[12].mxu1  ;;  %v1858_v59 = vpop.f32.mrb[13].mxu0 }
 0x33a   : > { %v1944_v14 = vadd.f32 %v2182_v5, %v3856_v52  ;;  %v1859_v39 = vadd.f32 %v3856_v52, %v1858_v59  ;;  %v1938_v34 = vpop.f32.mrb[13].mxu1 }
 0x33b   : > { %1970 = vst.msk [vmem:[%s3863_s16 + $0x68] sm:$0xff] %vm1390_vm5, %v1864_v21  ;;  %v1939_v43 = vadd.f32 %v3856_v52, %v1938_v34 }
 0x33c   : > { %1986 = vst.msk [vmem:[%s3863_s16 + $0xe8] sm:$0xff] %vm1390_vm5, %v1944_v14  ;;  %1969 = vst.msk [vmem:[%s3863_s16 + $0x60] sm:$0xff] %vm1390_vm5, %v1859_v39 }
 0x33d   : > { %1985 = vst.msk [vmem:[%s3863_s16 + $0xe0] sm:$0xff] %vm1390_vm5, %v1939_v43 }
 0x340   : > { %v2185_v2 = vpop.f32.mrb[14].mxu1 }
 0x341   : > { %v1954_v25 = vadd.f32 %v2185_v2, %v3856_v52  ;;  %v1948_v27 = vpop.f32.mrb[15].mxu1 }
 0x342   : > { %v1949_v6 = vadd.f32 %v3856_v52, %v1948_v27 }
 0x343   : > { %1988 = vst.msk [vmem:[%s3863_s16 + $0xf8] sm:$0xff] %vm1390_vm5, %v1954_v25 }
 0x344   : > { %1987 = vst.msk [vmem:[%s3863_s16 + $0xf0] sm:$0xff] %vm1390_vm5, %v1949_v6 }
 0x349   : > { %v2161_v9 = vpop.f32.mrb[14].mxu0 }
 0x34a   : > { %v1874_v36 = vadd.f32 %v2161_v9, %v3856_v52  ;;  %v1868_v12 = vpop.f32.mrb[15].mxu0 }
 0x34b   : > { %v1869_v41 = vadd.f32 %v3856_v52, %v1868_v12 }
 0x34c   : > { %1972 = vst.msk [vmem:[%s3863_s16 + $0x78] sm:$0xff] %vm1390_vm5, %v1874_v36 }
 0x34d   : > { %1971 = vst.msk [vmem:[%s3863_s16 + $0x70] sm:$0xff] %vm1390_vm5, %v1869_v41 }
 0x34e PF: > { %s13_s12 = sadd.s32 1, %s2222_s12  }
 0x34f   : > { %p10_p4 = scmp.ge.s32.totalorder %s13_s12, 4  }
 0x351   :  { %12 = sbr.rel (!%p10_p4) target bundleno = 1 (0x1), region = 62 }

</bundles_post_ra>
